<compile_context>
chip_gen: v5e
topology: v5e:2x2
jax: 0.10.0
libtpu: 0.0.40
codegen_flags: <defaults>
</compile_context>

<pallas_src>
import jax
import jax.numpy as jnp
from jax.experimental import pallas as pl
from jax.experimental.pallas import tpu as pltpu


def _round_up(x, m):
    return ((x + m - 1) // m) * m


def _make_kernel(n_layers, S, B, D, H, in_pad0):
    H4 = 4 * H

    def kernel(x_ref, wg_ref, b_ref, wfc_ref, out_ref):
        # ---- load weights once (bf16 MXU operands), biases (f32) ----
        w_ih, w_hh, bias = [], [], []
        off = 0
        for l in range(n_layers):
            rows = in_pad0 if l == 0 else H
            w_ih.append(wg_ref[off:off + rows, :])   # (in_rows, 4H) bf16
            off += rows
            w_hh.append(wg_ref[off:off + H, :])      # (H, 4H) bf16
            off += H
            bias.append(b_ref[l:l + 1, :])           # (1, 4H) f32 (b_ih + b_hh)

        # FC accumulator, initialized with the (hoisted) FC-bias broadcast.
        b_fc = b_ref[n_layers:n_layers + 1, 0:D]                     # (1, D)
        acc = jnp.broadcast_to(b_fc, (B, D)).astype(jnp.float32)

        # Hoisted layer-0 input projection for the whole sequence: one MXU
        # matmul, result kept in vregs (no VMEM scratch), off the serial chain.
        xproj0 = jnp.dot(x_ref[...].astype(jnp.bfloat16), w_ih[0],
                         preferred_element_type=jnp.float32) + bias[0]   # (S*B, 4H)

        # ---- wavefront-interleaved recurrence: dependent chain = S + L - 1 ----
        h = [jnp.zeros((B, H), jnp.float32) for _ in range(n_layers)]
        c = [jnp.zeros((B, H), jnp.float32) for _ in range(n_layers)]
        pending = [None] * n_layers   # input-side gate pre-activation for layer l's next step

        for w in range(S + n_layers - 1):            # static -> fully unrolled
            for l in range(n_layers - 1, -1, -1):    # reverse: consume pending before overwrite
                t = w - l
                if t < 0 or t >= S:
                    continue
                gpre = xproj0[t * B:(t + 1) * B, :] if l == 0 else pending[l]
                # bf16 operands, f32 accumulation; the add directly consumes the
                # matmul result (MRB in-place accumulate on v7x).
                gates = gpre + jnp.dot(h[l].astype(jnp.bfloat16), w_hh[l],
                                       preferred_element_type=jnp.float32)   # (B, 4H)
                # Two full-vreg EUP pushes over the fused 4H=128 gate slab.
                sig = jax.nn.sigmoid(gates)
                th = jnp.tanh(gates)
                i_g = sig[:, 0:H]
                f_g = sig[:, H:2 * H]
                o_g = sig[:, 3 * H:4 * H]
                g_g = th[:, 2 * H:3 * H]
                c[l] = f_g * c[l] + i_g * g_g
                h[l] = o_g * jnp.tanh(c[l])
                h_b = h[l].astype(jnp.bfloat16)
                if l + 1 < n_layers:
                    # Input projection for layer l+1 at time t; consumed at the
                    # next wave, so it overlaps layer l+1's current cell step.
                    pending[l + 1] = jnp.dot(h_b, w_ih[l + 1],
                                             preferred_element_type=jnp.float32) + bias[l + 1]
                if l == n_layers - 1:
                    # FC head fused into the last layer's recurrence.
                    acc = acc + jnp.dot(h_b, wfc_ref[t],
                                        preferred_element_type=jnp.float32)

        out_ref[...] = acc.astype(out_ref.dtype)

    return kernel


def lstm_reg_forward(x, layers, w_fc_k, b_fc_k):
    """x: (batch, seq, n_dim) float32.  Returns (batch, n_dim) float32."""
    B, S, D = x.shape
    H = layers[0][1].shape[0]          # w_hh_k is (H, 4H)
    n_layers = len(layers)
    H4 = 4 * H
    in_pad0 = _round_up(D, 16)         # bf16-tile-aligned row count for layer-0 W_ih

    # Time-major flattened input, feature axis zero-padded to match padded W_ih0.
    x_tm = jnp.transpose(x, (1, 0, 2)).reshape(S * B, D).astype(jnp.float32)
    x_pad = jnp.pad(x_tm, ((0, 0), (0, in_pad0 - D)))

    # One contiguous lane-dense bf16 slab with every gate weight (single DMA):
    # per layer [W_ih (row-padded) ; W_hh], each block (., 4H=128) wide.
    blocks = []
    for l, (w_ih, w_hh, _) in enumerate(layers):
        rows = in_pad0 if l == 0 else H
        w_ih_p = jnp.zeros((rows, H4), jnp.float32).at[:w_ih.shape[0], :].set(w_ih)
        blocks += [w_ih_p, w_hh]
    w_gates = jnp.concatenate(blocks, axis=0).astype(jnp.bfloat16)          # (R, 4H)

    # All biases in one f32 slab: row l = fused gate bias of layer l; the last
    # row carries b_fc in lanes [0:D].
    b_rows = [b for (_, _, b) in layers]
    b_fc_row = jnp.zeros((1, H4), jnp.float32).at[:, :D].set(b_fc_k)
    biases = jnp.concatenate(b_rows + [b_fc_row], axis=0)                   # (L+1, 4H)

    w_fc_b = w_fc_k.astype(jnp.bfloat16)                                    # (S, H, D)

    vmem = pl.BlockSpec(memory_space=pltpu.MemorySpace.VMEM)
    kernel = _make_kernel(n_layers, S, B, D, H, in_pad0)

    # NOTE(v7x): no grid at B=2 (splitting would duplicate all weight work);
    # add a leading "parallel" batch grid axis only once batch grows.
    return pl.pallas_call(
        kernel,
        out_shape=jax.ShapeDtypeStruct((B, D), jnp.float32),
        in_specs=[vmem, vmem, vmem, vmem],
        out_specs=vmem,
    )(x_pad, w_gates, biases, w_fc_b)


def init_params(key, n_dim, n_hidden, n_layers, seq_len):
    """Deterministic PyTorch-style uniform init, repacked for the kernel."""
    H = n_hidden
    keys = jax.random.split(key, 4 * n_layers + 2)
    layers = []
    kidx = 0
    for l in range(n_layers):
        in_size = n_dim if l == 0 else H
        k = 1.0 / jnp.sqrt(H)
        w_ih = jax.random.uniform(keys[kidx], (4 * H, in_size), jnp.float32, -k, k); kidx += 1
        w_hh = jax.random.uniform(keys[kidx], (4 * H, H), jnp.float32, -k, k); kidx += 1
        b_ih = jax.random.uniform(keys[kidx], (4 * H,), jnp.float32, -k, k); kidx += 1
        b_hh = jax.random.uniform(keys[kidx], (4 * H,), jnp.float32, -k, k); kidx += 1
        # fused-gate packing: x @ W_ih_(in,4H), h @ W_hh_(H,4H); gate blocks i,f,g,o
        w_ih_k = jnp.transpose(w_ih)                 # (in, 4H)
        w_hh_k = jnp.transpose(w_hh)                 # (H, 4H)
        b_k = (b_ih + b_hh).reshape(1, 4 * H)        # (1, 4H)
        layers.append((w_ih_k, w_hh_k, b_k))
    kf = 1.0 / jnp.sqrt(H * seq_len)
    w_fc = jax.random.uniform(keys[kidx], (n_dim, H * seq_len), jnp.float32, -kf, kf); kidx += 1
    b_fc = jax.random.uniform(keys[kidx], (n_dim,), jnp.float32, -kf, kf)
    # W_fc.T reshaped so w_fc_k[s] is the (H, n_dim) slab multiplying h_s
    w_fc_k = jnp.transpose(w_fc, (1, 0)).reshape(seq_len, H, n_dim)
    b_fc_k = b_fc.reshape(1, n_dim)
    return layers, w_fc_k, b_fc_k


def lstm_reg_reference(x, layers, w_fc_k, b_fc_k):
    """Pure-JAX f32 reference with identical semantics (sanity check)."""
    B, S, _ = x.shape
    seq = x
    for (w_ih, w_hh, b) in layers:
        H = w_hh.shape[0]
        h = jnp.zeros((B, H), jnp.float32)
        c = jnp.zeros((B, H), jnp.float32)
        outs = []
        for t in range(S):
            gates = seq[:, t, :] @ w_ih + h @ w_hh + b       # (B, 4H)
            i = jax.nn.sigmoid(gates[:, 0:H])
            f = jax.nn.sigmoid(gates[:, H:2 * H])
            g = jnp.tanh(gates[:, 2 * H:3 * H])
            o = jax.nn.sigmoid(gates[:, 3 * H:4 * H])
            c = f * c + i * g
            h = o * jnp.tanh(c)
            outs.append(h)
        seq = jnp.stack(outs, axis=1)                        # (B, S, H)
    flat = seq.reshape(B, -1)
    S_, H_, D_ = w_fc_k.shape
    return flat @ w_fc_k.reshape(S_ * H_, D_) + b_fc_k


if __name__ == "__main__":
    # small shapes consistent with the module: batch=2, seq=8, n_dim=4,
    # n_hidden=32, n_layers=2
    B, S, D, H, L = 2, 8, 4, 32, 2
    key = jax.random.PRNGKey(0)
    kx, kp = jax.random.split(key)
    x = jax.random.normal(kx, (B, S, D), dtype=jnp.float32)
    layers, w_fc_k, b_fc_k = init_params(kp, D, H, L, S)

    out = jax.jit(lstm_reg_forward)(x, layers, w_fc_k, b_fc_k)
    out = jax.block_until_ready(out)

    ref = lstm_reg_reference(x, layers, w_fc_k, b_fc_k)
    err = float(jnp.max(jnp.abs(out - ref)))
    assert out.shape == (B, D), out.shape
    assert err < 1e-2, f"max abs err {err}"
    print("KERNEL_OK")
</pallas_src>

<mosaic_0001>
module attributes {stable_mosaic.version = 11 : i64} {
  func.func @kernel(%arg0: memref<16x16xf32, #tpu.memory_space<vmem>>, %arg1: memref<112x128xbf16, #tpu.memory_space<vmem>>, %arg2: memref<3x128xf32, #tpu.memory_space<vmem>>, %arg3: memref<8x32x4xbf16, #tpu.memory_space<vmem>>, %arg4: memref<2x4xf32, #tpu.memory_space<vmem>>) attributes {dimension_semantics = [], scalar_prefetch = 0 : i64, scratch_operands = 0 : i64, tpu.core_type = #tpu.core_type<tc>} {
    %c0 = arith.constant 0 : index
    %c0_0 = arith.constant 0 : index
    %0 = vector.load %arg1[%c0, %c0_0] : memref<112x128xbf16, #tpu.memory_space<vmem>>, vector<16x128xbf16>
    %c16 = arith.constant 16 : index
    %c0_1 = arith.constant 0 : index
    %1 = vector.load %arg1[%c16, %c0_1] : memref<112x128xbf16, #tpu.memory_space<vmem>>, vector<32x128xbf16>
    %c0_2 = arith.constant 0 : index
    %c0_3 = arith.constant 0 : index
    %2 = vector.load %arg2[%c0_2, %c0_3] : memref<3x128xf32, #tpu.memory_space<vmem>>, vector<1x128xf32>
    %c48 = arith.constant 48 : index
    %c0_4 = arith.constant 0 : index
    %3 = vector.load %arg1[%c48, %c0_4] : memref<112x128xbf16, #tpu.memory_space<vmem>>, vector<32x128xbf16>
    %c80 = arith.constant 80 : index
    %c0_5 = arith.constant 0 : index
    %4 = vector.load %arg1[%c80, %c0_5] : memref<112x128xbf16, #tpu.memory_space<vmem>>, vector<32x128xbf16>
    %c1 = arith.constant 1 : index
    %c0_6 = arith.constant 0 : index
    %5 = vector.load %arg2[%c1, %c0_6] : memref<3x128xf32, #tpu.memory_space<vmem>>, vector<1x128xf32>
    %c2 = arith.constant 2 : index
    %c0_7 = arith.constant 0 : index
    %6 = vector.load %arg2[%c2, %c0_7] : memref<3x128xf32, #tpu.memory_space<vmem>>, vector<1x4xf32>
    %7 = vector.shape_cast %6 : vector<1x4xf32> to vector<1x4xf32>
    %8 = vector.broadcast %7 : vector<1x4xf32> to vector<2x4xf32>
    %c0_8 = arith.constant 0 : index
    %c0_9 = arith.constant 0 : index
    %9 = vector.load %arg0[%c0_8, %c0_9] : memref<16x16xf32, #tpu.memory_space<vmem>>, vector<16x16xf32>
    %10 = arith.truncf %9 : vector<16x16xf32> to vector<16x16xbf16>
    %cst = arith.constant dense<0.000000e+00> : vector<16x128xf32>
    %11 = tpu.matmul %10, %0, %cst {dimension_numbers = #tpu.dot_dimension_numbers<[1], [0], [0], [1], [0, 0, 1, 1], [], []>} : vector<16x16xbf16>, vector<16x128xbf16>, vector<16x128xf32> -> vector<16x128xf32>
    %12 = vector.broadcast %2 : vector<1x128xf32> to vector<16x128xf32>
    %13 = arith.addf %11, %12 : vector<16x128xf32>
    %cst_10 = arith.constant 0.000000e+00 : f32
    %14 = vector.broadcast %cst_10 : f32 to vector<2x32xf32>
    %cst_11 = arith.constant 0.000000e+00 : f32
    %15 = vector.broadcast %cst_11 : f32 to vector<2x32xf32>
    %cst_12 = arith.constant 0.000000e+00 : f32
    %16 = vector.broadcast %cst_12 : f32 to vector<2x32xf32>
    %cst_13 = arith.constant 0.000000e+00 : f32
    %17 = vector.broadcast %cst_13 : f32 to vector<2x32xf32>
    %18 = vector.extract_strided_slice %13 {offsets = [0, 0], sizes = [2, 128], strides = [1, 1]} : vector<16x128xf32> to vector<2x128xf32>
    %19 = arith.truncf %14 : vector<2x32xf32> to vector<2x32xbf16>
    %cst_14 = arith.constant dense<0.000000e+00> : vector<2x128xf32>
    %20 = tpu.matmul %19, %1, %cst_14 {dimension_numbers = #tpu.dot_dimension_numbers<[1], [0], [0], [1], [0, 0, 1, 1], [], []>} : vector<2x32xbf16>, vector<32x128xbf16>, vector<2x128xf32> -> vector<2x128xf32>
    %21 = arith.addf %18, %20 : vector<2x128xf32>
    %22 = arith.negf %21 : vector<2x128xf32>
    %23 = math.exp %22 : vector<2x128xf32>
    %cst_15 = arith.constant 1.000000e+00 : f32
    %24 = vector.broadcast %cst_15 : f32 to vector<2x128xf32>
    %25 = arith.addf %24, %23 : vector<2x128xf32>
    %26 = arith.divf %24, %25 : vector<2x128xf32>
    %27 = math.tanh %21 : vector<2x128xf32>
    %28 = vector.extract_strided_slice %26 {offsets = [0, 0], sizes = [2, 32], strides = [1, 1]} : vector<2x128xf32> to vector<2x32xf32>
    %29 = vector.extract_strided_slice %26 {offsets = [0, 32], sizes = [2, 32], strides = [1, 1]} : vector<2x128xf32> to vector<2x32xf32>
    %30 = vector.extract_strided_slice %26 {offsets = [0, 96], sizes = [2, 32], strides = [1, 1]} : vector<2x128xf32> to vector<2x32xf32>
    %31 = vector.extract_strided_slice %27 {offsets = [0, 64], sizes = [2, 32], strides = [1, 1]} : vector<2x128xf32> to vector<2x32xf32>
    %32 = arith.mulf %29, %16 : vector<2x32xf32>
    %33 = arith.mulf %28, %31 : vector<2x32xf32>
    %34 = arith.addf %32, %33 : vector<2x32xf32>
    %35 = math.tanh %34 : vector<2x32xf32>
    %36 = arith.mulf %30, %35 : vector<2x32xf32>
    %37 = arith.truncf %36 : vector<2x32xf32> to vector<2x32xbf16>
    %cst_16 = arith.constant dense<0.000000e+00> : vector<2x128xf32>
    %38 = tpu.matmul %37, %3, %cst_16 {dimension_numbers = #tpu.dot_dimension_numbers<[1], [0], [0], [1], [0, 0, 1, 1], [], []>} : vector<2x32xbf16>, vector<32x128xbf16>, vector<2x128xf32> -> vector<2x128xf32>
    %39 = vector.broadcast %5 : vector<1x128xf32> to vector<2x128xf32>
    %40 = arith.addf %38, %39 : vector<2x128xf32>
    %41 = arith.truncf %15 : vector<2x32xf32> to vector<2x32xbf16>
    %cst_17 = arith.constant dense<0.000000e+00> : vector<2x128xf32>
    %42 = tpu.matmul %41, %4, %cst_17 {dimension_numbers = #tpu.dot_dimension_numbers<[1], [0], [0], [1], [0, 0, 1, 1], [], []>} : vector<2x32xbf16>, vector<32x128xbf16>, vector<2x128xf32> -> vector<2x128xf32>
    %43 = arith.addf %40, %42 : vector<2x128xf32>
    %44 = arith.negf %43 : vector<2x128xf32>
    %45 = math.exp %44 : vector<2x128xf32>
    %cst_18 = arith.constant 1.000000e+00 : f32
    %46 = vector.broadcast %cst_18 : f32 to vector<2x128xf32>
    %47 = arith.addf %46, %45 : vector<2x128xf32>
    %48 = arith.divf %46, %47 : vector<2x128xf32>
    %49 = math.tanh %43 : vector<2x128xf32>
    %50 = vector.extract_strided_slice %48 {offsets = [0, 0], sizes = [2, 32], strides = [1, 1]} : vector<2x128xf32> to vector<2x32xf32>
    %51 = vector.extract_strided_slice %48 {offsets = [0, 32], sizes = [2, 32], strides = [1, 1]} : vector<2x128xf32> to vector<2x32xf32>
    %52 = vector.extract_strided_slice %48 {offsets = [0, 96], sizes = [2, 32], strides = [1, 1]} : vector<2x128xf32> to vector<2x32xf32>
    %53 = vector.extract_strided_slice %49 {offsets = [0, 64], sizes = [2, 32], strides = [1, 1]} : vector<2x128xf32> to vector<2x32xf32>
    %54 = arith.mulf %51, %17 : vector<2x32xf32>
    %55 = arith.mulf %50, %53 : vector<2x32xf32>
    %56 = arith.addf %54, %55 : vector<2x32xf32>
    %57 = math.tanh %56 : vector<2x32xf32>
    %58 = arith.mulf %52, %57 : vector<2x32xf32>
    %59 = arith.truncf %58 : vector<2x32xf32> to vector<2x32xbf16>
    %c0_19 = arith.constant 0 : index
    %c0_20 = arith.constant 0 : index
    %c0_21 = arith.constant 0 : index
    %60 = vector.load %arg3[%c0_19, %c0_20, %c0_21] : memref<8x32x4xbf16, #tpu.memory_space<vmem>>, vector<1x32x4xbf16>
    %61 = vector.shape_cast %60 : vector<1x32x4xbf16> to vector<32x4xbf16>
    %cst_22 = arith.constant dense<0.000000e+00> : vector<2x4xf32>
    %62 = tpu.matmul %59, %61, %cst_22 {dimension_numbers = #tpu.dot_dimension_numbers<[1], [0], [0], [1], [0, 0, 1, 1], [], []>} : vector<2x32xbf16>, vector<32x4xbf16>, vector<2x4xf32> -> vector<2x4xf32>
    %63 = arith.addf %8, %62 : vector<2x4xf32>
    %64 = vector.extract_strided_slice %13 {offsets = [2, 0], sizes = [2, 128], strides = [1, 1]} : vector<16x128xf32> to vector<2x128xf32>
    %65 = arith.truncf %36 : vector<2x32xf32> to vector<2x32xbf16>
    %cst_23 = arith.constant dense<0.000000e+00> : vector<2x128xf32>
    %66 = tpu.matmul %65, %1, %cst_23 {dimension_numbers = #tpu.dot_dimension_numbers<[1], [0], [0], [1], [0, 0, 1, 1], [], []>} : vector<2x32xbf16>, vector<32x128xbf16>, vector<2x128xf32> -> vector<2x128xf32>
    %67 = arith.addf %64, %66 : vector<2x128xf32>
    %68 = arith.negf %67 : vector<2x128xf32>
    %69 = math.exp %68 : vector<2x128xf32>
    %cst_24 = arith.constant 1.000000e+00 : f32
    %70 = vector.broadcast %cst_24 : f32 to vector<2x128xf32>
    %71 = arith.addf %70, %69 : vector<2x128xf32>
    %72 = arith.divf %70, %71 : vector<2x128xf32>
    %73 = math.tanh %67 : vector<2x128xf32>
    %74 = vector.extract_strided_slice %72 {offsets = [0, 0], sizes = [2, 32], strides = [1, 1]} : vector<2x128xf32> to vector<2x32xf32>
    %75 = vector.extract_strided_slice %72 {offsets = [0, 32], sizes = [2, 32], strides = [1, 1]} : vector<2x128xf32> to vector<2x32xf32>
    %76 = vector.extract_strided_slice %72 {offsets = [0, 96], sizes = [2, 32], strides = [1, 1]} : vector<2x128xf32> to vector<2x32xf32>
    %77 = vector.extract_strided_slice %73 {offsets = [0, 64], sizes = [2, 32], strides = [1, 1]} : vector<2x128xf32> to vector<2x32xf32>
    %78 = arith.mulf %75, %34 : vector<2x32xf32>
    %79 = arith.mulf %74, %77 : vector<2x32xf32>
    %80 = arith.addf %78, %79 : vector<2x32xf32>
    %81 = math.tanh %80 : vector<2x32xf32>
    %82 = arith.mulf %76, %81 : vector<2x32xf32>
    %83 = arith.truncf %82 : vector<2x32xf32> to vector<2x32xbf16>
    %cst_25 = arith.constant dense<0.000000e+00> : vector<2x128xf32>
    %84 = tpu.matmul %83, %3, %cst_25 {dimension_numbers = #tpu.dot_dimension_numbers<[1], [0], [0], [1], [0, 0, 1, 1], [], []>} : vector<2x32xbf16>, vector<32x128xbf16>, vector<2x128xf32> -> vector<2x128xf32>
    %85 = vector.broadcast %5 : vector<1x128xf32> to vector<2x128xf32>
    %86 = arith.addf %84, %85 : vector<2x128xf32>
    %87 = arith.truncf %58 : vector<2x32xf32> to vector<2x32xbf16>
    %cst_26 = arith.constant dense<0.000000e+00> : vector<2x128xf32>
    %88 = tpu.matmul %87, %4, %cst_26 {dimension_numbers = #tpu.dot_dimension_numbers<[1], [0], [0], [1], [0, 0, 1, 1], [], []>} : vector<2x32xbf16>, vector<32x128xbf16>, vector<2x128xf32> -> vector<2x128xf32>
    %89 = arith.addf %86, %88 : vector<2x128xf32>
    %90 = arith.negf %89 : vector<2x128xf32>
    %91 = math.exp %90 : vector<2x128xf32>
    %cst_27 = arith.constant 1.000000e+00 : f32
    %92 = vector.broadcast %cst_27 : f32 to vector<2x128xf32>
    %93 = arith.addf %92, %91 : vector<2x128xf32>
    %94 = arith.divf %92, %93 : vector<2x128xf32>
    %95 = math.tanh %89 : vector<2x128xf32>
    %96 = vector.extract_strided_slice %94 {offsets = [0, 0], sizes = [2, 32], strides = [1, 1]} : vector<2x128xf32> to vector<2x32xf32>
    %97 = vector.extract_strided_slice %94 {offsets = [0, 32], sizes = [2, 32], strides = [1, 1]} : vector<2x128xf32> to vector<2x32xf32>
    %98 = vector.extract_strided_slice %94 {offsets = [0, 96], sizes = [2, 32], strides = [1, 1]} : vector<2x128xf32> to vector<2x32xf32>
    %99 = vector.extract_strided_slice %95 {offsets = [0, 64], sizes = [2, 32], strides = [1, 1]} : vector<2x128xf32> to vector<2x32xf32>
    %100 = arith.mulf %97, %56 : vector<2x32xf32>
    %101 = arith.mulf %96, %99 : vector<2x32xf32>
    %102 = arith.addf %100, %101 : vector<2x32xf32>
    %103 = math.tanh %102 : vector<2x32xf32>
    %104 = arith.mulf %98, %103 : vector<2x32xf32>
    %105 = arith.truncf %104 : vector<2x32xf32> to vector<2x32xbf16>
    %c1_28 = arith.constant 1 : index
    %c0_29 = arith.constant 0 : index
    %c0_30 = arith.constant 0 : index
    %106 = vector.load %arg3[%c1_28, %c0_29, %c0_30] : memref<8x32x4xbf16, #tpu.memory_space<vmem>>, vector<1x32x4xbf16>
    %107 = vector.shape_cast %106 : vector<1x32x4xbf16> to vector<32x4xbf16>
    %cst_31 = arith.constant dense<0.000000e+00> : vector<2x4xf32>
    %108 = tpu.matmul %105, %107, %cst_31 {dimension_numbers = #tpu.dot_dimension_numbers<[1], [0], [0], [1], [0, 0, 1, 1], [], []>} : vector<2x32xbf16>, vector<32x4xbf16>, vector<2x4xf32> -> vector<2x4xf32>
    %109 = arith.addf %63, %108 : vector<2x4xf32>
    %110 = vector.extract_strided_slice %13 {offsets = [4, 0], sizes = [2, 128], strides = [1, 1]} : vector<16x128xf32> to vector<2x128xf32>
    %111 = arith.truncf %82 : vector<2x32xf32> to vector<2x32xbf16>
    %cst_32 = arith.constant dense<0.000000e+00> : vector<2x128xf32>
    %112 = tpu.matmul %111, %1, %cst_32 {dimension_numbers = #tpu.dot_dimension_numbers<[1], [0], [0], [1], [0, 0, 1, 1], [], []>} : vector<2x32xbf16>, vector<32x128xbf16>, vector<2x128xf32> -> vector<2x128xf32>
    %113 = arith.addf %110, %112 : vector<2x128xf32>
    %114 = arith.negf %113 : vector<2x128xf32>
    %115 = math.exp %114 : vector<2x128xf32>
    %cst_33 = arith.constant 1.000000e+00 : f32
    %116 = vector.broadcast %cst_33 : f32 to vector<2x128xf32>
    %117 = arith.addf %116, %115 : vector<2x128xf32>
    %118 = arith.divf %116, %117 : vector<2x128xf32>
    %119 = math.tanh %113 : vector<2x128xf32>
    %120 = vector.extract_strided_slice %118 {offsets = [0, 0], sizes = [2, 32], strides = [1, 1]} : vector<2x128xf32> to vector<2x32xf32>
    %121 = vector.extract_strided_slice %118 {offsets = [0, 32], sizes = [2, 32], strides = [1, 1]} : vector<2x128xf32> to vector<2x32xf32>
    %122 = vector.extract_strided_slice %118 {offsets = [0, 96], sizes = [2, 32], strides = [1, 1]} : vector<2x128xf32> to vector<2x32xf32>
    %123 = vector.extract_strided_slice %119 {offsets = [0, 64], sizes = [2, 32], strides = [1, 1]} : vector<2x128xf32> to vector<2x32xf32>
    %124 = arith.mulf %121, %80 : vector<2x32xf32>
    %125 = arith.mulf %120, %123 : vector<2x32xf32>
    %126 = arith.addf %124, %125 : vector<2x32xf32>
    %127 = math.tanh %126 : vector<2x32xf32>
    %128 = arith.mulf %122, %127 : vector<2x32xf32>
    %129 = arith.truncf %128 : vector<2x32xf32> to vector<2x32xbf16>
    %cst_34 = arith.constant dense<0.000000e+00> : vector<2x128xf32>
    %130 = tpu.matmul %129, %3, %cst_34 {dimension_numbers = #tpu.dot_dimension_numbers<[1], [0], [0], [1], [0, 0, 1, 1], [], []>} : vector<2x32xbf16>, vector<32x128xbf16>, vector<2x128xf32> -> vector<2x128xf32>
    %131 = vector.broadcast %5 : vector<1x128xf32> to vector<2x128xf32>
    %132 = arith.addf %130, %131 : vector<2x128xf32>
    %133 = arith.truncf %104 : vector<2x32xf32> to vector<2x32xbf16>
    %cst_35 = arith.constant dense<0.000000e+00> : vector<2x128xf32>
    %134 = tpu.matmul %133, %4, %cst_35 {dimension_numbers = #tpu.dot_dimension_numbers<[1], [0], [0], [1], [0, 0, 1, 1], [], []>} : vector<2x32xbf16>, vector<32x128xbf16>, vector<2x128xf32> -> vector<2x128xf32>
    %135 = arith.addf %132, %134 : vector<2x128xf32>
    %136 = arith.negf %135 : vector<2x128xf32>
    %137 = math.exp %136 : vector<2x128xf32>
    %cst_36 = arith.constant 1.000000e+00 : f32
    %138 = vector.broadcast %cst_36 : f32 to vector<2x128xf32>
    %139 = arith.addf %138, %137 : vector<2x128xf32>
    %140 = arith.divf %138, %139 : vector<2x128xf32>
    %141 = math.tanh %135 : vector<2x128xf32>
    %142 = vector.extract_strided_slice %140 {offsets = [0, 0], sizes = [2, 32], strides = [1, 1]} : vector<2x128xf32> to vector<2x32xf32>
    %143 = vector.extract_strided_slice %140 {offsets = [0, 32], sizes = [2, 32], strides = [1, 1]} : vector<2x128xf32> to vector<2x32xf32>
    %144 = vector.extract_strided_slice %140 {offsets = [0, 96], sizes = [2, 32], strides = [1, 1]} : vector<2x128xf32> to vector<2x32xf32>
    %145 = vector.extract_strided_slice %141 {offsets = [0, 64], sizes = [2, 32], strides = [1, 1]} : vector<2x128xf32> to vector<2x32xf32>
    %146 = arith.mulf %143, %102 : vector<2x32xf32>
    %147 = arith.mulf %142, %145 : vector<2x32xf32>
    %148 = arith.addf %146, %147 : vector<2x32xf32>
    %149 = math.tanh %148 : vector<2x32xf32>
    %150 = arith.mulf %144, %149 : vector<2x32xf32>
    %151 = arith.truncf %150 : vector<2x32xf32> to vector<2x32xbf16>
    %c2_37 = arith.constant 2 : index
    %c0_38 = arith.constant 0 : index
    %c0_39 = arith.constant 0 : index
    %152 = vector.load %arg3[%c2_37, %c0_38, %c0_39] : memref<8x32x4xbf16, #tpu.memory_space<vmem>>, vector<1x32x4xbf16>
    %153 = vector.shape_cast %152 : vector<1x32x4xbf16> to vector<32x4xbf16>
    %cst_40 = arith.constant dense<0.000000e+00> : vector<2x4xf32>
    %154 = tpu.matmul %151, %153, %cst_40 {dimension_numbers = #tpu.dot_dimension_numbers<[1], [0], [0], [1], [0, 0, 1, 1], [], []>} : vector<2x32xbf16>, vector<32x4xbf16>, vector<2x4xf32> -> vector<2x4xf32>
    %155 = arith.addf %109, %154 : vector<2x4xf32>
    %156 = vector.extract_strided_slice %13 {offsets = [6, 0], sizes = [2, 128], strides = [1, 1]} : vector<16x128xf32> to vector<2x128xf32>
    %157 = arith.truncf %128 : vector<2x32xf32> to vector<2x32xbf16>
    %cst_41 = arith.constant dense<0.000000e+00> : vector<2x128xf32>
    %158 = tpu.matmul %157, %1, %cst_41 {dimension_numbers = #tpu.dot_dimension_numbers<[1], [0], [0], [1], [0, 0, 1, 1], [], []>} : vector<2x32xbf16>, vector<32x128xbf16>, vector<2x128xf32> -> vector<2x128xf32>
    %159 = arith.addf %156, %158 : vector<2x128xf32>
    %160 = arith.negf %159 : vector<2x128xf32>
    %161 = math.exp %160 : vector<2x128xf32>
    %cst_42 = arith.constant 1.000000e+00 : f32
    %162 = vector.broadcast %cst_42 : f32 to vector<2x128xf32>
    %163 = arith.addf %162, %161 : vector<2x128xf32>
    %164 = arith.divf %162, %163 : vector<2x128xf32>
    %165 = math.tanh %159 : vector<2x128xf32>
    %166 = vector.extract_strided_slice %164 {offsets = [0, 0], sizes = [2, 32], strides = [1, 1]} : vector<2x128xf32> to vector<2x32xf32>
    %167 = vector.extract_strided_slice %164 {offsets = [0, 32], sizes = [2, 32], strides = [1, 1]} : vector<2x128xf32> to vector<2x32xf32>
    %168 = vector.extract_strided_slice %164 {offsets = [0, 96], sizes = [2, 32], strides = [1, 1]} : vector<2x128xf32> to vector<2x32xf32>
    %169 = vector.extract_strided_slice %165 {offsets = [0, 64], sizes = [2, 32], strides = [1, 1]} : vector<2x128xf32> to vector<2x32xf32>
    %170 = arith.mulf %167, %126 : vector<2x32xf32>
    %171 = arith.mulf %166, %169 : vector<2x32xf32>
    %172 = arith.addf %170, %171 : vector<2x32xf32>
    %173 = math.tanh %172 : vector<2x32xf32>
    %174 = arith.mulf %168, %173 : vector<2x32xf32>
    %175 = arith.truncf %174 : vector<2x32xf32> to vector<2x32xbf16>
    %cst_43 = arith.constant dense<0.000000e+00> : vector<2x128xf32>
    %176 = tpu.matmul %175, %3, %cst_43 {dimension_numbers = #tpu.dot_dimension_numbers<[1], [0], [0], [1], [0, 0, 1, 1], [], []>} : vector<2x32xbf16>, vector<32x128xbf16>, vector<2x128xf32> -> vector<2x128xf32>
    %177 = vector.broadcast %5 : vector<1x128xf32> to vector<2x128xf32>
    %178 = arith.addf %176, %177 : vector<2x128xf32>
    %179 = arith.truncf %150 : vector<2x32xf32> to vector<2x32xbf16>
    %cst_44 = arith.constant dense<0.000000e+00> : vector<2x128xf32>
    %180 = tpu.matmul %179, %4, %cst_44 {dimension_numbers = #tpu.dot_dimension_numbers<[1], [0], [0], [1], [0, 0, 1, 1], [], []>} : vector<2x32xbf16>, vector<32x128xbf16>, vector<2x128xf32> -> vector<2x128xf32>
    %181 = arith.addf %178, %180 : vector<2x128xf32>
    %182 = arith.negf %181 : vector<2x128xf32>
    %183 = math.exp %182 : vector<2x128xf32>
    %cst_45 = arith.constant 1.000000e+00 : f32
    %184 = vector.broadcast %cst_45 : f32 to vector<2x128xf32>
    %185 = arith.addf %184, %183 : vector<2x128xf32>
    %186 = arith.divf %184, %185 : vector<2x128xf32>
    %187 = math.tanh %181 : vector<2x128xf32>
    %188 = vector.extract_strided_slice %186 {offsets = [0, 0], sizes = [2, 32], strides = [1, 1]} : vector<2x128xf32> to vector<2x32xf32>
    %189 = vector.extract_strided_slice %186 {offsets = [0, 32], sizes = [2, 32], strides = [1, 1]} : vector<2x128xf32> to vector<2x32xf32>
    %190 = vector.extract_strided_slice %186 {offsets = [0, 96], sizes = [2, 32], strides = [1, 1]} : vector<2x128xf32> to vector<2x32xf32>
    %191 = vector.extract_strided_slice %187 {offsets = [0, 64], sizes = [2, 32], strides = [1, 1]} : vector<2x128xf32> to vector<2x32xf32>
    %192 = arith.mulf %189, %148 : vector<2x32xf32>
    %193 = arith.mulf %188, %191 : vector<2x32xf32>
    %194 = arith.addf %192, %193 : vector<2x32xf32>
    %195 = math.tanh %194 : vector<2x32xf32>
    %196 = arith.mulf %190, %195 : vector<2x32xf32>
    %197 = arith.truncf %196 : vector<2x32xf32> to vector<2x32xbf16>
    %c3 = arith.constant 3 : index
    %c0_46 = arith.constant 0 : index
    %c0_47 = arith.constant 0 : index
    %198 = vector.load %arg3[%c3, %c0_46, %c0_47] : memref<8x32x4xbf16, #tpu.memory_space<vmem>>, vector<1x32x4xbf16>
    %199 = vector.shape_cast %198 : vector<1x32x4xbf16> to vector<32x4xbf16>
    %cst_48 = arith.constant dense<0.000000e+00> : vector<2x4xf32>
    %200 = tpu.matmul %197, %199, %cst_48 {dimension_numbers = #tpu.dot_dimension_numbers<[1], [0], [0], [1], [0, 0, 1, 1], [], []>} : vector<2x32xbf16>, vector<32x4xbf16>, vector<2x4xf32> -> vector<2x4xf32>
    %201 = arith.addf %155, %200 : vector<2x4xf32>
    %202 = vector.extract_strided_slice %13 {offsets = [8, 0], sizes = [2, 128], strides = [1, 1]} : vector<16x128xf32> to vector<2x128xf32>
    %203 = arith.truncf %174 : vector<2x32xf32> to vector<2x32xbf16>
    %cst_49 = arith.constant dense<0.000000e+00> : vector<2x128xf32>
    %204 = tpu.matmul %203, %1, %cst_49 {dimension_numbers = #tpu.dot_dimension_numbers<[1], [0], [0], [1], [0, 0, 1, 1], [], []>} : vector<2x32xbf16>, vector<32x128xbf16>, vector<2x128xf32> -> vector<2x128xf32>
    %205 = arith.addf %202, %204 : vector<2x128xf32>
    %206 = arith.negf %205 : vector<2x128xf32>
    %207 = math.exp %206 : vector<2x128xf32>
    %cst_50 = arith.constant 1.000000e+00 : f32
    %208 = vector.broadcast %cst_50 : f32 to vector<2x128xf32>
    %209 = arith.addf %208, %207 : vector<2x128xf32>
    %210 = arith.divf %208, %209 : vector<2x128xf32>
    %211 = math.tanh %205 : vector<2x128xf32>
    %212 = vector.extract_strided_slice %210 {offsets = [0, 0], sizes = [2, 32], strides = [1, 1]} : vector<2x128xf32> to vector<2x32xf32>
    %213 = vector.extract_strided_slice %210 {offsets = [0, 32], sizes = [2, 32], strides = [1, 1]} : vector<2x128xf32> to vector<2x32xf32>
    %214 = vector.extract_strided_slice %210 {offsets = [0, 96], sizes = [2, 32], strides = [1, 1]} : vector<2x128xf32> to vector<2x32xf32>
    %215 = vector.extract_strided_slice %211 {offsets = [0, 64], sizes = [2, 32], strides = [1, 1]} : vector<2x128xf32> to vector<2x32xf32>
    %216 = arith.mulf %213, %172 : vector<2x32xf32>
    %217 = arith.mulf %212, %215 : vector<2x32xf32>
    %218 = arith.addf %216, %217 : vector<2x32xf32>
    %219 = math.tanh %218 : vector<2x32xf32>
    %220 = arith.mulf %214, %219 : vector<2x32xf32>
    %221 = arith.truncf %220 : vector<2x32xf32> to vector<2x32xbf16>
    %cst_51 = arith.constant dense<0.000000e+00> : vector<2x128xf32>
    %222 = tpu.matmul %221, %3, %cst_51 {dimension_numbers = #tpu.dot_dimension_numbers<[1], [0], [0], [1], [0, 0, 1, 1], [], []>} : vector<2x32xbf16>, vector<32x128xbf16>, vector<2x128xf32> -> vector<2x128xf32>
    %223 = vector.broadcast %5 : vector<1x128xf32> to vector<2x128xf32>
    %224 = arith.addf %222, %223 : vector<2x128xf32>
    %225 = arith.truncf %196 : vector<2x32xf32> to vector<2x32xbf16>
    %cst_52 = arith.constant dense<0.000000e+00> : vector<2x128xf32>
    %226 = tpu.matmul %225, %4, %cst_52 {dimension_numbers = #tpu.dot_dimension_numbers<[1], [0], [0], [1], [0, 0, 1, 1], [], []>} : vector<2x32xbf16>, vector<32x128xbf16>, vector<2x128xf32> -> vector<2x128xf32>
    %227 = arith.addf %224, %226 : vector<2x128xf32>
    %228 = arith.negf %227 : vector<2x128xf32>
    %229 = math.exp %228 : vector<2x128xf32>
    %cst_53 = arith.constant 1.000000e+00 : f32
    %230 = vector.broadcast %cst_53 : f32 to vector<2x128xf32>
    %231 = arith.addf %230, %229 : vector<2x128xf32>
    %232 = arith.divf %230, %231 : vector<2x128xf32>
    %233 = math.tanh %227 : vector<2x128xf32>
    %234 = vector.extract_strided_slice %232 {offsets = [0, 0], sizes = [2, 32], strides = [1, 1]} : vector<2x128xf32> to vector<2x32xf32>
    %235 = vector.extract_strided_slice %232 {offsets = [0, 32], sizes = [2, 32], strides = [1, 1]} : vector<2x128xf32> to vector<2x32xf32>
    %236 = vector.extract_strided_slice %232 {offsets = [0, 96], sizes = [2, 32], strides = [1, 1]} : vector<2x128xf32> to vector<2x32xf32>
    %237 = vector.extract_strided_slice %233 {offsets = [0, 64], sizes = [2, 32], strides = [1, 1]} : vector<2x128xf32> to vector<2x32xf32>
    %238 = arith.mulf %235, %194 : vector<2x32xf32>
    %239 = arith.mulf %234, %237 : vector<2x32xf32>
    %240 = arith.addf %238, %239 : vector<2x32xf32>
    %241 = math.tanh %240 : vector<2x32xf32>
    %242 = arith.mulf %236, %241 : vector<2x32xf32>
    %243 = arith.truncf %242 : vector<2x32xf32> to vector<2x32xbf16>
    %c4 = arith.constant 4 : index
    %c0_54 = arith.constant 0 : index
    %c0_55 = arith.constant 0 : index
    %244 = vector.load %arg3[%c4, %c0_54, %c0_55] : memref<8x32x4xbf16, #tpu.memory_space<vmem>>, vector<1x32x4xbf16>
    %245 = vector.shape_cast %244 : vector<1x32x4xbf16> to vector<32x4xbf16>
    %cst_56 = arith.constant dense<0.000000e+00> : vector<2x4xf32>
    %246 = tpu.matmul %243, %245, %cst_56 {dimension_numbers = #tpu.dot_dimension_numbers<[1], [0], [0], [1], [0, 0, 1, 1], [], []>} : vector<2x32xbf16>, vector<32x4xbf16>, vector<2x4xf32> -> vector<2x4xf32>
    %247 = arith.addf %201, %246 : vector<2x4xf32>
    %248 = vector.extract_strided_slice %13 {offsets = [10, 0], sizes = [2, 128], strides = [1, 1]} : vector<16x128xf32> to vector<2x128xf32>
    %249 = arith.truncf %220 : vector<2x32xf32> to vector<2x32xbf16>
    %cst_57 = arith.constant dense<0.000000e+00> : vector<2x128xf32>
    %250 = tpu.matmul %249, %1, %cst_57 {dimension_numbers = #tpu.dot_dimension_numbers<[1], [0], [0], [1], [0, 0, 1, 1], [], []>} : vector<2x32xbf16>, vector<32x128xbf16>, vector<2x128xf32> -> vector<2x128xf32>
    %251 = arith.addf %248, %250 : vector<2x128xf32>
    %252 = arith.negf %251 : vector<2x128xf32>
    %253 = math.exp %252 : vector<2x128xf32>
    %cst_58 = arith.constant 1.000000e+00 : f32
    %254 = vector.broadcast %cst_58 : f32 to vector<2x128xf32>
    %255 = arith.addf %254, %253 : vector<2x128xf32>
    %256 = arith.divf %254, %255 : vector<2x128xf32>
    %257 = math.tanh %251 : vector<2x128xf32>
    %258 = vector.extract_strided_slice %256 {offsets = [0, 0], sizes = [2, 32], strides = [1, 1]} : vector<2x128xf32> to vector<2x32xf32>
    %259 = vector.extract_strided_slice %256 {offsets = [0, 32], sizes = [2, 32], strides = [1, 1]} : vector<2x128xf32> to vector<2x32xf32>
    %260 = vector.extract_strided_slice %256 {offsets = [0, 96], sizes = [2, 32], strides = [1, 1]} : vector<2x128xf32> to vector<2x32xf32>
    %261 = vector.extract_strided_slice %257 {offsets = [0, 64], sizes = [2, 32], strides = [1, 1]} : vector<2x128xf32> to vector<2x32xf32>
    %262 = arith.mulf %259, %218 : vector<2x32xf32>
    %263 = arith.mulf %258, %261 : vector<2x32xf32>
    %264 = arith.addf %262, %263 : vector<2x32xf32>
    %265 = math.tanh %264 : vector<2x32xf32>
    %266 = arith.mulf %260, %265 : vector<2x32xf32>
    %267 = arith.truncf %266 : vector<2x32xf32> to vector<2x32xbf16>
    %cst_59 = arith.constant dense<0.000000e+00> : vector<2x128xf32>
    %268 = tpu.matmul %267, %3, %cst_59 {dimension_numbers = #tpu.dot_dimension_numbers<[1], [0], [0], [1], [0, 0, 1, 1], [], []>} : vector<2x32xbf16>, vector<32x128xbf16>, vector<2x128xf32> -> vector<2x128xf32>
    %269 = vector.broadcast %5 : vector<1x128xf32> to vector<2x128xf32>
    %270 = arith.addf %268, %269 : vector<2x128xf32>
    %271 = arith.truncf %242 : vector<2x32xf32> to vector<2x32xbf16>
    %cst_60 = arith.constant dense<0.000000e+00> : vector<2x128xf32>
    %272 = tpu.matmul %271, %4, %cst_60 {dimension_numbers = #tpu.dot_dimension_numbers<[1], [0], [0], [1], [0, 0, 1, 1], [], []>} : vector<2x32xbf16>, vector<32x128xbf16>, vector<2x128xf32> -> vector<2x128xf32>
    %273 = arith.addf %270, %272 : vector<2x128xf32>
    %274 = arith.negf %273 : vector<2x128xf32>
    %275 = math.exp %274 : vector<2x128xf32>
    %cst_61 = arith.constant 1.000000e+00 : f32
    %276 = vector.broadcast %cst_61 : f32 to vector<2x128xf32>
    %277 = arith.addf %276, %275 : vector<2x128xf32>
    %278 = arith.divf %276, %277 : vector<2x128xf32>
    %279 = math.tanh %273 : vector<2x128xf32>
    %280 = vector.extract_strided_slice %278 {offsets = [0, 0], sizes = [2, 32], strides = [1, 1]} : vector<2x128xf32> to vector<2x32xf32>
    %281 = vector.extract_strided_slice %278 {offsets = [0, 32], sizes = [2, 32], strides = [1, 1]} : vector<2x128xf32> to vector<2x32xf32>
    %282 = vector.extract_strided_slice %278 {offsets = [0, 96], sizes = [2, 32], strides = [1, 1]} : vector<2x128xf32> to vector<2x32xf32>
    %283 = vector.extract_strided_slice %279 {offsets = [0, 64], sizes = [2, 32], strides = [1, 1]} : vector<2x128xf32> to vector<2x32xf32>
    %284 = arith.mulf %281, %240 : vector<2x32xf32>
    %285 = arith.mulf %280, %283 : vector<2x32xf32>
    %286 = arith.addf %284, %285 : vector<2x32xf32>
    %287 = math.tanh %286 : vector<2x32xf32>
    %288 = arith.mulf %282, %287 : vector<2x32xf32>
    %289 = arith.truncf %288 : vector<2x32xf32> to vector<2x32xbf16>
    %c5 = arith.constant 5 : index
    %c0_62 = arith.constant 0 : index
    %c0_63 = arith.constant 0 : index
    %290 = vector.load %arg3[%c5, %c0_62, %c0_63] : memref<8x32x4xbf16, #tpu.memory_space<vmem>>, vector<1x32x4xbf16>
    %291 = vector.shape_cast %290 : vector<1x32x4xbf16> to vector<32x4xbf16>
    %cst_64 = arith.constant dense<0.000000e+00> : vector<2x4xf32>
    %292 = tpu.matmul %289, %291, %cst_64 {dimension_numbers = #tpu.dot_dimension_numbers<[1], [0], [0], [1], [0, 0, 1, 1], [], []>} : vector<2x32xbf16>, vector<32x4xbf16>, vector<2x4xf32> -> vector<2x4xf32>
    %293 = arith.addf %247, %292 : vector<2x4xf32>
    %294 = vector.extract_strided_slice %13 {offsets = [12, 0], sizes = [2, 128], strides = [1, 1]} : vector<16x128xf32> to vector<2x128xf32>
    %295 = arith.truncf %266 : vector<2x32xf32> to vector<2x32xbf16>
    %cst_65 = arith.constant dense<0.000000e+00> : vector<2x128xf32>
    %296 = tpu.matmul %295, %1, %cst_65 {dimension_numbers = #tpu.dot_dimension_numbers<[1], [0], [0], [1], [0, 0, 1, 1], [], []>} : vector<2x32xbf16>, vector<32x128xbf16>, vector<2x128xf32> -> vector<2x128xf32>
    %297 = arith.addf %294, %296 : vector<2x128xf32>
    %298 = arith.negf %297 : vector<2x128xf32>
    %299 = math.exp %298 : vector<2x128xf32>
    %cst_66 = arith.constant 1.000000e+00 : f32
    %300 = vector.broadcast %cst_66 : f32 to vector<2x128xf32>
    %301 = arith.addf %300, %299 : vector<2x128xf32>
    %302 = arith.divf %300, %301 : vector<2x128xf32>
    %303 = math.tanh %297 : vector<2x128xf32>
    %304 = vector.extract_strided_slice %302 {offsets = [0, 0], sizes = [2, 32], strides = [1, 1]} : vector<2x128xf32> to vector<2x32xf32>
    %305 = vector.extract_strided_slice %302 {offsets = [0, 32], sizes = [2, 32], strides = [1, 1]} : vector<2x128xf32> to vector<2x32xf32>
    %306 = vector.extract_strided_slice %302 {offsets = [0, 96], sizes = [2, 32], strides = [1, 1]} : vector<2x128xf32> to vector<2x32xf32>
    %307 = vector.extract_strided_slice %303 {offsets = [0, 64], sizes = [2, 32], strides = [1, 1]} : vector<2x128xf32> to vector<2x32xf32>
    %308 = arith.mulf %305, %264 : vector<2x32xf32>
    %309 = arith.mulf %304, %307 : vector<2x32xf32>
    %310 = arith.addf %308, %309 : vector<2x32xf32>
    %311 = math.tanh %310 : vector<2x32xf32>
    %312 = arith.mulf %306, %311 : vector<2x32xf32>
    %313 = arith.truncf %312 : vector<2x32xf32> to vector<2x32xbf16>
    %cst_67 = arith.constant dense<0.000000e+00> : vector<2x128xf32>
    %314 = tpu.matmul %313, %3, %cst_67 {dimension_numbers = #tpu.dot_dimension_numbers<[1], [0], [0], [1], [0, 0, 1, 1], [], []>} : vector<2x32xbf16>, vector<32x128xbf16>, vector<2x128xf32> -> vector<2x128xf32>
    %315 = vector.broadcast %5 : vector<1x128xf32> to vector<2x128xf32>
    %316 = arith.addf %314, %315 : vector<2x128xf32>
    %317 = arith.truncf %288 : vector<2x32xf32> to vector<2x32xbf16>
    %cst_68 = arith.constant dense<0.000000e+00> : vector<2x128xf32>
    %318 = tpu.matmul %317, %4, %cst_68 {dimension_numbers = #tpu.dot_dimension_numbers<[1], [0], [0], [1], [0, 0, 1, 1], [], []>} : vector<2x32xbf16>, vector<32x128xbf16>, vector<2x128xf32> -> vector<2x128xf32>
    %319 = arith.addf %316, %318 : vector<2x128xf32>
    %320 = arith.negf %319 : vector<2x128xf32>
    %321 = math.exp %320 : vector<2x128xf32>
    %cst_69 = arith.constant 1.000000e+00 : f32
    %322 = vector.broadcast %cst_69 : f32 to vector<2x128xf32>
    %323 = arith.addf %322, %321 : vector<2x128xf32>
    %324 = arith.divf %322, %323 : vector<2x128xf32>
    %325 = math.tanh %319 : vector<2x128xf32>
    %326 = vector.extract_strided_slice %324 {offsets = [0, 0], sizes = [2, 32], strides = [1, 1]} : vector<2x128xf32> to vector<2x32xf32>
    %327 = vector.extract_strided_slice %324 {offsets = [0, 32], sizes = [2, 32], strides = [1, 1]} : vector<2x128xf32> to vector<2x32xf32>
    %328 = vector.extract_strided_slice %324 {offsets = [0, 96], sizes = [2, 32], strides = [1, 1]} : vector<2x128xf32> to vector<2x32xf32>
    %329 = vector.extract_strided_slice %325 {offsets = [0, 64], sizes = [2, 32], strides = [1, 1]} : vector<2x128xf32> to vector<2x32xf32>
    %330 = arith.mulf %327, %286 : vector<2x32xf32>
    %331 = arith.mulf %326, %329 : vector<2x32xf32>
    %332 = arith.addf %330, %331 : vector<2x32xf32>
    %333 = math.tanh %332 : vector<2x32xf32>
    %334 = arith.mulf %328, %333 : vector<2x32xf32>
    %335 = arith.truncf %334 : vector<2x32xf32> to vector<2x32xbf16>
    %c6 = arith.constant 6 : index
    %c0_70 = arith.constant 0 : index
    %c0_71 = arith.constant 0 : index
    %336 = vector.load %arg3[%c6, %c0_70, %c0_71] : memref<8x32x4xbf16, #tpu.memory_space<vmem>>, vector<1x32x4xbf16>
    %337 = vector.shape_cast %336 : vector<1x32x4xbf16> to vector<32x4xbf16>
    %cst_72 = arith.constant dense<0.000000e+00> : vector<2x4xf32>
    %338 = tpu.matmul %335, %337, %cst_72 {dimension_numbers = #tpu.dot_dimension_numbers<[1], [0], [0], [1], [0, 0, 1, 1], [], []>} : vector<2x32xbf16>, vector<32x4xbf16>, vector<2x4xf32> -> vector<2x4xf32>
    %339 = arith.addf %293, %338 : vector<2x4xf32>
    %340 = vector.extract_strided_slice %13 {offsets = [14, 0], sizes = [2, 128], strides = [1, 1]} : vector<16x128xf32> to vector<2x128xf32>
    %341 = arith.truncf %312 : vector<2x32xf32> to vector<2x32xbf16>
    %cst_73 = arith.constant dense<0.000000e+00> : vector<2x128xf32>
    %342 = tpu.matmul %341, %1, %cst_73 {dimension_numbers = #tpu.dot_dimension_numbers<[1], [0], [0], [1], [0, 0, 1, 1], [], []>} : vector<2x32xbf16>, vector<32x128xbf16>, vector<2x128xf32> -> vector<2x128xf32>
    %343 = arith.addf %340, %342 : vector<2x128xf32>
    %344 = arith.negf %343 : vector<2x128xf32>
    %345 = math.exp %344 : vector<2x128xf32>
    %cst_74 = arith.constant 1.000000e+00 : f32
    %346 = vector.broadcast %cst_74 : f32 to vector<2x128xf32>
    %347 = arith.addf %346, %345 : vector<2x128xf32>
    %348 = arith.divf %346, %347 : vector<2x128xf32>
    %349 = math.tanh %343 : vector<2x128xf32>
    %350 = vector.extract_strided_slice %348 {offsets = [0, 0], sizes = [2, 32], strides = [1, 1]} : vector<2x128xf32> to vector<2x32xf32>
    %351 = vector.extract_strided_slice %348 {offsets = [0, 32], sizes = [2, 32], strides = [1, 1]} : vector<2x128xf32> to vector<2x32xf32>
    %352 = vector.extract_strided_slice %348 {offsets = [0, 96], sizes = [2, 32], strides = [1, 1]} : vector<2x128xf32> to vector<2x32xf32>
    %353 = vector.extract_strided_slice %349 {offsets = [0, 64], sizes = [2, 32], strides = [1, 1]} : vector<2x128xf32> to vector<2x32xf32>
    %354 = arith.mulf %351, %310 : vector<2x32xf32>
    %355 = arith.mulf %350, %353 : vector<2x32xf32>
    %356 = arith.addf %354, %355 : vector<2x32xf32>
    %357 = math.tanh %356 : vector<2x32xf32>
    %358 = arith.mulf %352, %357 : vector<2x32xf32>
    %359 = arith.truncf %358 : vector<2x32xf32> to vector<2x32xbf16>
    %cst_75 = arith.constant dense<0.000000e+00> : vector<2x128xf32>
    %360 = tpu.matmul %359, %3, %cst_75 {dimension_numbers = #tpu.dot_dimension_numbers<[1], [0], [0], [1], [0, 0, 1, 1], [], []>} : vector<2x32xbf16>, vector<32x128xbf16>, vector<2x128xf32> -> vector<2x128xf32>
    %361 = vector.broadcast %5 : vector<1x128xf32> to vector<2x128xf32>
    %362 = arith.addf %360, %361 : vector<2x128xf32>
    %363 = arith.truncf %334 : vector<2x32xf32> to vector<2x32xbf16>
    %cst_76 = arith.constant dense<0.000000e+00> : vector<2x128xf32>
    %364 = tpu.matmul %363, %4, %cst_76 {dimension_numbers = #tpu.dot_dimension_numbers<[1], [0], [0], [1], [0, 0, 1, 1], [], []>} : vector<2x32xbf16>, vector<32x128xbf16>, vector<2x128xf32> -> vector<2x128xf32>
    %365 = arith.addf %362, %364 : vector<2x128xf32>
    %366 = arith.negf %365 : vector<2x128xf32>
    %367 = math.exp %366 : vector<2x128xf32>
    %cst_77 = arith.constant 1.000000e+00 : f32
    %368 = vector.broadcast %cst_77 : f32 to vector<2x128xf32>
    %369 = arith.addf %368, %367 : vector<2x128xf32>
    %370 = arith.divf %368, %369 : vector<2x128xf32>
    %371 = math.tanh %365 : vector<2x128xf32>
    %372 = vector.extract_strided_slice %370 {offsets = [0, 0], sizes = [2, 32], strides = [1, 1]} : vector<2x128xf32> to vector<2x32xf32>
    %373 = vector.extract_strided_slice %370 {offsets = [0, 32], sizes = [2, 32], strides = [1, 1]} : vector<2x128xf32> to vector<2x32xf32>
    %374 = vector.extract_strided_slice %370 {offsets = [0, 96], sizes = [2, 32], strides = [1, 1]} : vector<2x128xf32> to vector<2x32xf32>
    %375 = vector.extract_strided_slice %371 {offsets = [0, 64], sizes = [2, 32], strides = [1, 1]} : vector<2x128xf32> to vector<2x32xf32>
    %376 = arith.mulf %373, %332 : vector<2x32xf32>
    %377 = arith.mulf %372, %375 : vector<2x32xf32>
    %378 = arith.addf %376, %377 : vector<2x32xf32>
    %379 = math.tanh %378 : vector<2x32xf32>
    %380 = arith.mulf %374, %379 : vector<2x32xf32>
    %381 = arith.truncf %380 : vector<2x32xf32> to vector<2x32xbf16>
    %c7 = arith.constant 7 : index
    %c0_78 = arith.constant 0 : index
    %c0_79 = arith.constant 0 : index
    %382 = vector.load %arg3[%c7, %c0_78, %c0_79] : memref<8x32x4xbf16, #tpu.memory_space<vmem>>, vector<1x32x4xbf16>
    %383 = vector.shape_cast %382 : vector<1x32x4xbf16> to vector<32x4xbf16>
    %cst_80 = arith.constant dense<0.000000e+00> : vector<2x4xf32>
    %384 = tpu.matmul %381, %383, %cst_80 {dimension_numbers = #tpu.dot_dimension_numbers<[1], [0], [0], [1], [0, 0, 1, 1], [], []>} : vector<2x32xbf16>, vector<32x4xbf16>, vector<2x4xf32> -> vector<2x4xf32>
    %385 = arith.addf %339, %384 : vector<2x4xf32>
    %c0_81 = arith.constant 0 : index
    %c0_82 = arith.constant 0 : index
    %386 = vector.load %arg4[%c0_81, %c0_82] : memref<2x4xf32, #tpu.memory_space<vmem>>, vector<2x4xf32>
    tpu.vector_store %arg4[%c0_81, %c0_82], %385 {strides = array<i32>} : memref<2x4xf32, #tpu.memory_space<vmem>>, vector<2x4xf32>,
    return
  }
}

</mosaic_0001>

<bundles_post_ra>
// kernel: lstm_reg_forward.1
= control target key start
LH: loop header
LB: loop body
LE: loop exit
PB: predicated region body
PF: predicated region fallthrough
CT: control target
= control target key end

     0   :  { %vm47_vm0 = vcmask 130048   ;;  %s2186_s0 = inlined_call_operand.vmem [shape: f32[16,16], index: 0, kind: input, shape index: {}]   ;;  %s2187_s1 = inlined_call_operand.vmem [shape: bf16[112,128], index: 1, kind: input, shape index: {}]   ;;  %s2188_s2 = inlined_call_operand.vmem [shape: f32[3,128], index: 2, kind: input, shape index: {}]   ;;  %s2189_s3 = inlined_call_operand.vmem [shape: bf16[8,32,4], index: 3, kind: input, shape index: {}]   ;;  %s2190_s4 = inlined_call_operand.hbm [shape: f32[2,4], index: 4, kind: output, shape index: {}]  }
   0x1   :  { %v1615_v0 = vld [vmem:[%s2187_s1] sm:$0xff]  ;;  %v1839_v1 = vld [vmem:[%s2187_s1 + $0x10] sm:$0xff]  ;;  %v38_v3 = vld [vmem:[%s2186_s0 + $0x8] sm:$0xff] }
   0x2   :  { %v37_v2 = vld [vmem:[%s2186_s0] sm:$0xff]  ;;  %58 = vmatpush.bf16.msra.mxu0 %v1615_v0  ;;  %87 = vmatpush.bf16.msra.mxu1 %v1839_v1  ;;  %v1851_v5 = vld [vmem:[%s2187_s1 + $0x8] sm:$0xff] }
   0x3   :  { %v39_v4 = vpack.c.bf16 %v38_v3, %v37_v2 }
   0x4   :  { %9 = vsyncpa [#allocation3], 0  ;;  %v1804_v6 = vmov 0   ;;  %v1861_v7 = vld [vmem:[%s2188_s2] ss:$0 sm:$0xff]  ;;  %s1805_s26 = smov 64  }
   0x5   :  { %1452 = vmatmul.msk.bf16.vlgmr.msra.gmra.mxu0 %vm47_vm0, %v39_v4  ;;  %s1806_s27 = smov 32   ;;  %v1876_v33 = vld [vmem:[%s2187_s1 + $0x30] sm:$0xff]  ;;  %v1881_v34 = vld [vmem:[%s2187_s1 + $0x20] sm:$0xff]  ;;  %v1888_v35 = vld [vmem:[%s2187_s1 + $0x28] sm:$0xff]  ;;  %vm77_vm5 = vcmask 261120   ;;  %s1807_s30 = smov [#allocation2]  }
   0x6   :  { %88 = vmatpush.bf16.msra.mxu1 %v1851_v5  ;;  %183 = vmatpush.bf16.msra.mxu3 %v1876_v33  ;;  %v1893_v36 = vld [vmem:[%s2187_s1 + $0x18] sm:$0xff]  ;;  %v1914_v46 = vld [vmem:[%s2188_s2 + $0x1] ss:$0 sm:$0xff]  ;;  %s1439_s7 = sshll.u32 %s2190_s4, 4  ;;  %s1440_s7 = int_to_ptr.hbm [resolvable:$true] %s1439_s7 }
   0x7   :  { %158 = vmatpush.bf16.msra.mxu2 %v1881_v34 }
   0x9   :  { %89 = vmatmul.bf16.vlgmr.msra.gmra.mxu1 %v1804_v6 }
   0xa   :  { %271 = vmatpush.bf16.msrb.mxu1 %v1839_v1  ;;  %184 = vmatpush.bf16.msra.mxu3 %v1888_v35 }
   0xb   :  { %159 = vmatpush.bf16.msra.mxu2 %v1893_v36 }
   0xd   :  { %185 = vmatmul.bf16.vlgmr.msra.gmra.mxu3 %v1804_v6 }
   0xe   :  { %272 = vmatpush.bf16.msrb.mxu1 %v1851_v5  ;;  %349 = vmatpush.bf16.msrb.mxu3 %v1876_v33 }
   0xf   :  { %336 = vmatpush.bf16.msrb.mxu2 %v1881_v34 }
  0x12   :  { %438 = vmatpush.bf16.msra.mxu1 %v1839_v1  ;;  %350 = vmatpush.bf16.msrb.mxu3 %v1888_v35 }
  0x13   :  { %337 = vmatpush.bf16.msrb.mxu2 %v1893_v36 }
  0x16   :  { %439 = vmatpush.bf16.msra.mxu1 %v1851_v5  ;;  %516 = vmatpush.bf16.msra.mxu3 %v1876_v33 }
  0x1a   :  { %517 = vmatpush.bf16.msra.mxu3 %v1888_v35 }
  0x82   :  { %v60_v8 = vpop.f32.mrf.mxu0 }
  0x83   :  { %v1864_v9 = vadd.f32 %v1861_v7, %v60_v8 }
  0x86   :  { %v90_v10 = vpop.f32.mrf.mxu1 }
  0x87   :  { %v94_v11 = vadd.f32 %v90_v10, %v1864_v9 }
  0x89   :  { %1645 = vtanh.f32 %v94_v11  ;;  %v1461_v14 = vmul.f32 -1.442695, %v94_v11 }
  0x8b   :  { %1647 = vpow2.f32 %v1461_v14 }
  0x8e   :  { %v92_v12 = vpop.f32.mrf.mxu1 }
  0x8f   :  { %v1646_v13 = vpop.eup %1645 }
  0x90   :  { %117 = vrot.lane.b32.xlu0 %v1646_v13, %s1805_s26  ;;  %v186_v41 = vpop.f32.mrf.mxu3 }
  0x91   :  { %v1648_v15 = vpop.eup %1647 }
  0x92   :  { %v98_v16 = vadd.f32 1.0, %v1648_v15 }
  0x94   :  { %1649 = vrcp.f32 %v98_v16  ;;  %v110_v22 = vand.u32 2147483648, %v98_v16  ;;  %vm104_vm2 = vweird.f32 %v98_v16  ;;  %v108_v23 = vand.u32 2147483647, %v98_v16 }
  0x96   :  { %v111_v25 = vor.u32 1.1754944e-38, %v110_v22  ;;  %vm109_vm4 = vcmp.eq.f32.partialorder %v108_v23, 8.507059e+37 }
  0x98   :  { %v188_v42 = vpop.f32.mrf.mxu3 }
  0x9a   :  { %v1650_v17 = vpop.eup %1649 }
  0x9b   :  { %v100_v18 = vmul.f32 %v1650_v17, %v98_v16  ;;  %vm105_vm1 = vweird.f32 %v1650_v17 }
  0x9c   :  { %vm106_vm3 = vmor %vm104_vm2, %vm105_vm1 }
  0x9d   :  { %v101_v19 = vsub.f32 1.0, %v100_v18 }
  0x9f   :  { %v102_v20 = vmul.f32 %v1650_v17, %v101_v19 }
  0xa1   :  { %v103_v21 = vadd.f32 %v1650_v17, %v102_v20 }
  0xa3   :  { %v107_v24 = vsel %vm106_vm3, %v1650_v17, %v103_v21 }
  0xa4   :  { %v112_v27 = vsel %vm109_vm4, %v111_v25, %v107_v24 }
  0xa5   :  { %v115_v29 = vmul.f32 0.0, %v112_v27 }
 0x102   :  { %v118_v26 = vpop.permute.xlu0 %117 }
 0x103   :  { %v120_v28 = vmul.f32 %v118_v26, %v112_v27 }
 0x105   :  { %122 = vrot.lane.b32.xlu0 %v120_v28, %s1806_s27 }
 0x177   :  { %v123_v30 = vpop.permute.xlu0 %122 }
 0x178   :  { %v1869_v31 = vadd.f32 %v123_v30, %v115_v29 }
 0x17a   :  { %1651 = vtanh.f32 %v1869_v31  ;;  %v303_v24 = vrot.slane %v1869_v31, 6 }
 0x180   :  { %v1652_v32 = vpop.eup %1651 }
 0x181   :  { %128 = vrot.lane.b32.xlu1 %v1652_v32, %s1805_s26 }
 0x1f3   :  { %v129_v37 = vpop.permute.xlu1 %128 }
 0x1f4   :  { %v131_v38 = vmul.f32 %v129_v37, %v112_v27 }
 0x1f6   :  { %v132_v39 = vpack.c.bf16 %v131_v38, %v131_v38 }
 0x1f8   :  { %135 = vrot.lane.b32.xlu1 %v132_v39, %s1806_s27 }
 0x26a   :  { %v136_v40 = vpop.permute.xlu1 %135 }
 0x26b   :  { %1470 = vmatmul.msk.bf16.vlgmr.msra.gmra.mxu2 %vm77_vm5, %v136_v40  ;;  %1489 = vmatmul.msk.bf16.vlgmr.msrb.gmra.mxu1 %vm77_vm5, %v136_v40 }
 0x26c   :  { %503 = vmatpush.bf16.msra.mxu2 %v1881_v34  ;;  %605 = vmatpush.bf16.msrb.mxu1 %v1839_v1 }
 0x270   :  { %504 = vmatpush.bf16.msra.mxu2 %v1893_v36  ;;  %606 = vmatpush.bf16.msrb.mxu1 %v1851_v5 }
 0x2e8   :  { %v274_v43 = vpop.f32.mrf.mxu1 }
 0x2e9   :  { %v279_v44 = vrot.slane %v274_v43, 6 }
 0x2eb   :  { %v281_v45 = vadd.f32 %v279_v44, %v1864_v9 }
 0x2ed   :  { %1653 = vtanh.f32 %v281_v45  ;;  %v1490_v54 = vmul.f32 -1.442695, %v281_v45  ;;  %v1622_v45 = vld [vmem:[%s2189_s3] sm:$0xff] }
 0x2ee   :  { %v161_v47 = vpop.f32.mrf.mxu2 }
 0x2ef   :  { %v162_v48 = vadd.f32 %v1914_v46, %v161_v47 }
 0x2f0   :  { %v276_v49 = vpop.f32.mrf.mxu1 }
 0x2f1   :  { %v190_v50 = vadd.f32 %v186_v41, %v162_v48  ;;  %v1623_v41 = vld [vmem:[%s2189_s3 + $0x8] sm:$0xff]  ;;  %v1948_v49 = vpop.f32.mrf.mxu0 }
 0x2f2   :  { %257 = vmatpush.bf16.msrb.mxu0 %v1623_v41 }
 0x2f3   :  { %v1654_v51 = vpop.eup %1653  ;;  %1655 = vtanh.f32 %v190_v50  ;;  %v1479_v55 = vmul.f32 -1.442695, %v190_v50 }
 0x2f4   :  { %307 = vrot.lane.b32.xlu2 %v1654_v51, %s1805_s26  ;;  %1657 = vpow2.f32 %v1490_v54 }
 0x2f5   :  { %1659 = vpow2.f32 %v1479_v55 }
 0x2f6   :  { %v163_v52 = vpop.f32.mrf.mxu2  ;;  %258 = vmatpush.bf16.msrb.mxu0 %v1622_v45 }
 0x2f9   :  { %v1656_v53 = vpop.eup %1655 }
 0x2fa   :  { %v1658_v56 = vpop.eup %1657 }
 0x2fb   :  { %v285_v57 = vadd.f32 1.0, %v1658_v56  ;;  %v1660_v58 = vpop.eup %1659 }
 0x2fc   :  { %213 = vrot.lane.b32.xlu2 %v1656_v53, %s1805_s26  ;;  %v194_v59 = vadd.f32 1.0, %v1660_v58 }
 0x2fd   :  { %1661 = vrcp.f32 %v285_v57  ;;  %v297_v6 = vand.u32 2147483648, %v285_v57  ;;  %vm291_vm7 = vweird.f32 %v285_v57  ;;  %v295_v8 = vand.u32 2147483647, %v285_v57 }
 0x2fe   :  { %1663 = vrcp.f32 %v194_v59  ;;  %v206_v17 = vand.u32 2147483648, %v194_v59  ;;  %vm200_vm11 = vweird.f32 %v194_v59  ;;  %v204_v18 = vand.u32 2147483647, %v194_v59 }
 0x2ff   :  { %v298_v12 = vor.u32 1.1754944e-38, %v297_v6  ;;  %vm296_vm9 = vcmp.eq.f32.partialorder %v295_v8, 8.507059e+37 }
 0x300   :  { %v207_v20 = vor.u32 1.1754944e-38, %v206_v17  ;;  %vm205_vm13 = vcmp.eq.f32.partialorder %v204_v18, 8.507059e+37 }
 0x303   :  { %v1662_v60 = vpop.eup %1661 }
 0x304   :  { %v287_v61 = vmul.f32 %v1662_v60, %v285_v57  ;;  %v1664_v63 = vpop.eup %1663  ;;  %vm292_vm6 = vweird.f32 %v1662_v60 }
 0x305   :  { %v196_v2 = vmul.f32 %v1664_v63, %v194_v59  ;;  %vm293_vm8 = vmor %vm291_vm7, %vm292_vm6  ;;  %vm201_vm10 = vweird.f32 %v1664_v63 }
 0x306   :  { %v288_v62 = vsub.f32 1.0, %v287_v61  ;;  %vm202_vm12 = vmor %vm200_vm11, %vm201_vm10 }
 0x307   :  { %v197_v4 = vsub.f32 1.0, %v196_v2 }
 0x308   :  { %v289_v0 = vmul.f32 %v1662_v60, %v288_v62 }
 0x309   :  { %v198_v11 = vmul.f32 %v1664_v63, %v197_v4 }
 0x30a   :  { %v290_v3 = vadd.f32 %v1662_v60, %v289_v0 }
 0x30b   :  { %v199_v16 = vadd.f32 %v1664_v63, %v198_v11 }
 0x30c   :  { %v294_v10 = vsel %vm293_vm8, %v1662_v60, %v290_v3 }
 0x30d   :  { %v299_v14 = vsel %vm296_vm9, %v298_v12, %v294_v10  ;;  %v203_v19 = vsel %vm202_vm12, %v1664_v63, %v199_v16 }
 0x30e   :  { %v208_v22 = vsel %vm205_vm13, %v207_v20, %v203_v19  ;;  %v305_v25 = vmul.f32 %v303_v24, %v299_v14 }
 0x30f   :  { %v211_v28 = vmul.f32 0.0, %v208_v22 }
 0x34e   :  { %v308_v13 = vpop.permute.xlu2 %307 }
 0x34f   :  { %v310_v15 = vmul.f32 %v308_v13, %v299_v14 }
 0x351   :  { %312 = vrot.lane.b32.xlu0 %v310_v15, %s1806_s27 }
 0x356   :  { %v214_v21 = vpop.permute.xlu2 %213 }
 0x357   :  { %v216_v23 = vmul.f32 %v214_v21, %v208_v22 }
 0x359   :  { %218 = vrot.lane.b32.xlu1 %v216_v23, %s1806_s27 }
 0x3c3   :  { %v313_v26 = vpop.permute.xlu0 %312 }
 0x3c4   :  { %v1922_v27 = vadd.f32 %v313_v26, %v305_v25 }
 0x3c6   :  { %1665 = vtanh.f32 %v1922_v27 }
 0x3cb   :  { %v219_v29 = vpop.permute.xlu1 %218 }
 0x3cc   :  { %v1666_v30 = vpop.eup %1665  ;;  %v1925_v32 = vadd.f32 %v219_v29, %v211_v28 }
 0x3cd   :  { %318 = vrot.lane.b32.xlu2 %v1666_v30, %s1805_s26 }
 0x3ce   :  { %1667 = vtanh.f32 %v1925_v32 }
 0x3d4   :  { %v1668_v37 = vpop.eup %1667 }
 0x3d5   :  { %224 = vrot.lane.b32.xlu0 %v1668_v37, %s1805_s26 }
 0x427   :  { %v319_v38 = vpop.permute.xlu2 %318 }
 0x428   :  { %v321_v31 = vmul.f32 %v319_v38, %v299_v14 }
 0x42a   :  { %v322_v39 = vpack.c.bf16 %v321_v31, %v321_v31 }
 0x42c   :  { %v324_v40 = vrot.slane %v322_v39, 1 }
 0x42e   :  { %325 = vrot.lane.b32.xlu1 %v324_v40, %s1806_s27  ;;  %v470_v40 = vrot.slane %v1922_v27, 6 }
 0x447   :  { %v225_v42 = vpop.permute.xlu0 %224 }
 0x448   :  { %v227_v43 = vmul.f32 %v225_v42, %v208_v22 }
 0x44a   :  { %v228_v44 = vpack.c.bf16 %v227_v43, %v227_v43 }
 0x44c   :  { %234 = vrot.lane.b32.xlu2 %v228_v44, %s1806_s27 }
 0x4a0   :  { %v326_v47 = vpop.permute.xlu1 %325 }
 0x4a1   :  { %1491 = vmatmul.msk.bf16.vlgmr.msrb.gmra.mxu2 %vm77_vm5, %v326_v47  ;;  %1507 = vmatmul.msk.bf16.vlgmr.msra.gmra.mxu1 %vm77_vm5, %v326_v47 }
 0x4a2   :  { %670 = vmatpush.bf16.msrb.mxu2 %v1881_v34  ;;  %772 = vmatpush.bf16.msra.mxu1 %v1839_v1 }
 0x4a6   :  { %v235_v48 = vpop.permute.xlu2 %234  ;;  %671 = vmatpush.bf16.msrb.mxu2 %v1893_v36  ;;  %773 = vmatpush.bf16.msra.mxu1 %v1851_v5 }
 0x4a7   :  { %1488 = vmatmul.msk.bf16.vlgmr.msrb.gmra.mxu0 %vm77_vm5, %v235_v48  ;;  %1492 = vmatmul.msk.bf16.vlgmr.msrb.gmra.mxu3 %vm77_vm5, %v235_v48 }
 0x4a8   :  { %683 = vmatpush.bf16.msrb.mxu3 %v1876_v33 }
 0x4ac   :  { %684 = vmatpush.bf16.msrb.mxu3 %v1888_v35 }
 0x51e   :  { %v441_v50 = vpop.f32.mrf.mxu1 }
 0x51f   :  { %v446_v51 = vrot.slane %v441_v50, 4 }
 0x521   :  { %v448_v52 = vadd.f32 %v446_v51, %v1864_v9 }
 0x523   :  { %1669 = vtanh.f32 %v448_v52  ;;  %v1508_v0 = vmul.f32 -1.442695, %v448_v52 }
 0x524   :  { %v1951_v53 = vpop.f32.mrf.mxu0  ;;  %v339_v54 = vpop.f32.mrf.mxu2 }
 0x525   :  { %v340_v57 = vadd.f32 %v1914_v46, %v339_v54 }
 0x526   :  { %v443_v55 = vpop.f32.mrf.mxu1 }
 0x529   :  { %v1670_v56 = vpop.eup %1669 }
 0x52a   :  { %474 = vrot.lane.b32.xlu0 %v1670_v56, %s1805_s26  ;;  %v352_v58 = vpop.f32.mrf.mxu3 }
 0x52b   :  { %v356_v59 = vadd.f32 %v352_v58, %v340_v57  ;;  %v1624_v58 = vld [vmem:[%s2189_s3 + $0x10] sm:$0xff] }
 0x52c   :  { %v262_v60 = vpop.f32.mrf.mxu0  ;;  %v341_v61 = vpop.f32.mrf.mxu2 }
 0x52d   :  { %1671 = vtanh.f32 %v356_v59  ;;  %v1493_v3 = vmul.f32 -1.442695, %v356_v59 }
 0x52e   :  { %1673 = vpow2.f32 %v1508_v0 }
 0x52f   :  { %1675 = vpow2.f32 %v1493_v3 }
 0x532   :  { %v354_v62 = vpop.f32.mrf.mxu3 }
 0x533   :  { %v1672_v63 = vpop.eup %1671 }
 0x534   :  { %379 = vrot.lane.b32.xlu1 %v1672_v63, %s1805_s26  ;;  %v1674_v2 = vpop.eup %1673  ;;  %v1644_v63 = vld [vmem:[%s2188_s2 + $0x2] ss:$0 sm:$0xff] }
 0x535   :  { %v452_v4 = vadd.f32 1.0, %v1674_v2  ;;  %v1676_v6 = vpop.eup %1675  ;;  %v264_v3 = vadd.f32 %v1644_v63, %v1951_v53 }
 0x536   :  { %v360_v10 = vadd.f32 1.0, %v1676_v6 }
 0x537   :  { %1677 = vrcp.f32 %v452_v4  ;;  %v464_v17 = vand.u32 2147483648, %v452_v4  ;;  %vm458_vm15 = vweird.f32 %v452_v4  ;;  %v462_v18 = vand.u32 2147483647, %v452_v4 }
 0x538   :  { %1679 = vrcp.f32 %v360_v10  ;;  %v372_v28 = vand.u32 2147483648, %v360_v10  ;;  %vm366_vm3 = vweird.f32 %v360_v10  ;;  %v370_v29 = vand.u32 2147483647, %v360_v10 }
 0x539   :  { %v465_v21 = vor.u32 1.1754944e-38, %v464_v17  ;;  %vm463_vm1 = vcmp.eq.f32.partialorder %v462_v18, 8.507059e+37 }
 0x53a   :  { %v373_v37 = vor.u32 1.1754944e-38, %v372_v28  ;;  %vm371_vm6 = vcmp.eq.f32.partialorder %v370_v29, 8.507059e+37 }
 0x53d   :  { %v1678_v8 = vpop.eup %1677 }
 0x53e   :  { %v454_v11 = vmul.f32 %v1678_v8, %v452_v4  ;;  %v1680_v13 = vpop.eup %1679  ;;  %vm459_vm14 = vweird.f32 %v1678_v8 }
 0x53f   :  { %v362_v15 = vmul.f32 %v1680_v13, %v360_v10  ;;  %vm460_vm0 = vmor %vm458_vm15, %vm459_vm14  ;;  %vm367_vm2 = vweird.f32 %v1680_v13 }
 0x540   :  { %v455_v12 = vsub.f32 1.0, %v454_v11  ;;  %vm368_vm4 = vmor %vm366_vm3, %vm367_vm2 }
 0x541   :  { %v363_v19 = vsub.f32 1.0, %v362_v15 }
 0x542   :  { %v456_v14 = vmul.f32 %v1678_v8, %v455_v12 }
 0x543   :  { %v364_v22 = vmul.f32 %v1680_v13, %v363_v19 }
 0x544   :  { %v457_v16 = vadd.f32 %v1678_v8, %v456_v14 }
 0x545   :  { %v365_v26 = vadd.f32 %v1680_v13, %v364_v22 }
 0x546   :  { %v461_v20 = vsel %vm460_vm0, %v1678_v8, %v457_v16 }
 0x547   :  { %v466_v23 = vsel %vm463_vm1, %v465_v21, %v461_v20  ;;  %v369_v30 = vsel %vm368_vm4, %v1680_v13, %v365_v26 }
 0x548   :  { %v374_v31 = vsel %vm371_vm6, %v373_v37, %v369_v30  ;;  %v472_v41 = vmul.f32 %v470_v40, %v466_v23 }
 0x549   :  { %v377_v45 = vmul.f32 %v374_v31, %v1925_v32  ;;  %v1625_v32 = vld [vmem:[%s2189_s3 + $0x18] sm:$0xff] }
 0x54a   :  { %424 = vmatpush.bf16.msra.mxu0 %v1625_v32 }
 0x54e   :  { %425 = vmatpush.bf16.msra.mxu0 %v1624_v58 }
 0x59c   :  { %v475_v24 = vpop.permute.xlu0 %474 }
 0x59d   :  { %v477_v25 = vmul.f32 %v475_v24, %v466_v23 }
 0x59f   :  { %479 = vrot.lane.b32.xlu2 %v477_v25, %s1806_s27 }
 0x5a6   :  { %v380_v38 = vpop.permute.xlu1 %379 }
 0x5a7   :  { %v382_v39 = vmul.f32 %v380_v38, %v374_v31 }
 0x5a9   :  { %384 = vrot.lane.b32.xlu0 %v382_v39, %s1806_s27 }
 0x5f9   :  { %v480_v42 = vpop.permute.xlu2 %479 }
 0x5fa   :  { %v1959_v43 = vadd.f32 %v480_v42, %v472_v41 }
 0x5fc   :  { %1681 = vtanh.f32 %v1959_v43 }
 0x602   :  { %v1682_v44 = vpop.eup %1681 }
 0x603   :  { %485 = vrot.lane.b32.xlu1 %v1682_v44, %s1805_s26 }
 0x61b   :  { %v385_v47 = vpop.permute.xlu0 %384 }
 0x61c   :  { %v1964_v48 = vadd.f32 %v385_v47, %v377_v45 }
 0x61e   :  { %1683 = vtanh.f32 %v1964_v48 }
 0x624   :  { %v1684_v50 = vpop.eup %1683 }
 0x625   :  { %390 = vrot.lane.b32.xlu2 %v1684_v50, %s1805_s26 }
 0x675   :  { %v486_v27 = vpop.permute.xlu1 %485 }
 0x676   :  { %v488_v51 = vmul.f32 %v486_v27, %v466_v23 }
 0x678   :  { %v489_v52 = vpack.c.bf16 %v488_v51, %v488_v51 }
 0x67a   :  { %v491_v54 = vrot.slane %v489_v52, 2 }
 0x67c   :  { %492 = vrot.lane.b32.xlu0 %v491_v54, %s1806_s27 }
 0x67f   :  { %v391_v55 = vpop.permute.xlu2 %390 }
 0x680   :  { %v393_v56 = vmul.f32 %v391_v55, %v374_v31 }
 0x682   :  { %v394_v57 = vpack.c.bf16 %v393_v56, %v393_v56  ;;  %v637_v56 = vrot.slane %v1959_v43, 6 }
 0x684   :  { %401 = vrot.lane.b32.xlu1 %v394_v57, %s1806_s27 }
 0x6ee   :  { %v493_v59 = vpop.permute.xlu0 %492 }
 0x6ef   :  { %1509 = vmatmul.msk.bf16.vlgmr.msra.gmra.mxu2 %vm77_vm5, %v493_v59  ;;  %1525 = vmatmul.msk.bf16.vlgmr.msrb.gmra.mxu1 %vm77_vm5, %v493_v59 }
 0x6f0   :  { %833 = vmatpush.bf16.msra.mxu2 %v1881_v34  ;;  %935 = vmatpush.bf16.msrb.mxu1 %v1839_v1 }
 0x6f4   :  { %834 = vmatpush.bf16.msra.mxu2 %v1893_v36  ;;  %936 = vmatpush.bf16.msrb.mxu1 %v1851_v5 }
 0x6f6   :  { %v402_v60 = vpop.permute.xlu1 %401 }
 0x6f7   :  { %1506 = vmatmul.msk.bf16.vlgmr.msra.gmra.mxu0 %vm77_vm5, %v402_v60  ;;  %1510 = vmatmul.msk.bf16.vlgmr.msra.gmra.mxu3 %vm77_vm5, %v402_v60 }
 0x6f8   :  { %846 = vmatpush.bf16.msra.mxu3 %v1876_v33 }
 0x6fc   :  { %847 = vmatpush.bf16.msra.mxu3 %v1888_v35 }
 0x76c   :  { %v608_v61 = vpop.f32.mrf.mxu1 }
 0x76d   :  { %v613_v62 = vrot.slane %v608_v61, 2 }
 0x76f   :  { %v615_v0 = vadd.f32 %v613_v62, %v1864_v9 }
 0x771   :  { %1685 = vtanh.f32 %v615_v0  ;;  %v1526_v17 = vmul.f32 -1.442695, %v615_v0 }
 0x772   :  { %v506_v2 = vpop.f32.mrf.mxu2 }
 0x773   :  { %v507_v11 = vadd.f32 %v1914_v46, %v506_v2 }
 0x774   :  { %v427_v4 = vpop.f32.mrf.mxu0  ;;  %v610_v6 = vpop.f32.mrf.mxu1 }
 0x775   :  { %v1991_v8 = vadd.f32 %v427_v4, %v264_v3 }
 0x777   :  { %v1686_v10 = vpop.eup %1685 }
 0x778   :  { %641 = vrot.lane.b32.xlu2 %v1686_v10, %s1805_s26 }
 0x77a   :  { %v508_v12 = vpop.f32.mrf.mxu2  ;;  %v519_v13 = vpop.f32.mrf.mxu3 }
 0x77b   :  { %v523_v14 = vadd.f32 %v519_v13, %v507_v11  ;;  %v1626_v11 = vld [vmem:[%s2189_s3 + $0x20] sm:$0xff] }
 0x77c   :  { %v429_v15 = vpop.f32.mrf.mxu0 }
 0x77d   :  { %1687 = vtanh.f32 %v523_v14  ;;  %v1511_v23 = vmul.f32 -1.442695, %v523_v14  ;;  %v2028_v14 = vadd.f32 %v1861_v7, %v1948_v49 }
 0x77e   :  { %1689 = vpow2.f32 %v1526_v17 }
 0x782   :  { %v521_v16 = vpop.f32.mrf.mxu3 }
 0x783   :  { %v1688_v9 = vpop.eup %1687 }
 0x784   :  { %546 = vrot.lane.b32.xlu0 %v1688_v9, %s1805_s26  ;;  %v1690_v53 = vpop.eup %1689 }
 0x785   :  { %v619_v18 = vadd.f32 1.0, %v1690_v53 }
 0x787   :  { %1691 = vrcp.f32 %v619_v18  ;;  %v631_v25 = vand.u32 2147483648, %v619_v18  ;;  %vm625_vm8 = vweird.f32 %v619_v18  ;;  %v629_v26 = vand.u32 2147483647, %v619_v18 }
 0x788   :  { %1693 = vpow2.f32 %v1511_v23 }
 0x789   :  { %v632_v29 = vor.u32 1.1754944e-38, %v631_v25  ;;  %vm630_vm10 = vcmp.eq.f32.partialorder %v629_v26, 8.507059e+37 }
 0x78d   :  { %v1692_v19 = vpop.eup %1691 }
 0x78e   :  { %v621_v20 = vmul.f32 %v1692_v19, %v619_v18  ;;  %vm626_vm7 = vweird.f32 %v1692_v19  ;;  %v1694_v38 = vpop.eup %1693 }
 0x78f   :  { %vm627_vm9 = vmor %vm625_vm8, %vm626_vm7  ;;  %v527_v39 = vadd.f32 1.0, %v1694_v38 }
 0x790   :  { %v622_v21 = vsub.f32 1.0, %v621_v20 }
 0x791   :  { %1695 = vrcp.f32 %v527_v39  ;;  %v539_v47 = vand.u32 2147483648, %v527_v39  ;;  %vm533_vm12 = vweird.f32 %v527_v39  ;;  %v537_v50 = vand.u32 2147483647, %v527_v39 }
 0x792   :  { %v623_v22 = vmul.f32 %v1692_v19, %v622_v21 }
 0x793   :  { %v540_v51 = vor.u32 1.1754944e-38, %v539_v47  ;;  %vm538_vm14 = vcmp.eq.f32.partialorder %v537_v50, 8.507059e+37 }
 0x794   :  { %v624_v24 = vadd.f32 %v1692_v19, %v623_v22 }
 0x796   :  { %v628_v28 = vsel %vm627_vm9, %v1692_v19, %v624_v24 }
 0x797   :  { %v633_v37 = vsel %vm630_vm10, %v632_v29, %v628_v28  ;;  %v1696_v40 = vpop.eup %1695 }
 0x798   :  { %v529_v41 = vmul.f32 %v1696_v40, %v527_v39  ;;  %vm534_vm11 = vweird.f32 %v1696_v40  ;;  %v639_v57 = vmul.f32 %v637_v56, %v633_v37 }
 0x799   :  { %vm535_vm13 = vmor %vm533_vm12, %vm534_vm11 }
 0x79a   :  { %v530_v42 = vsub.f32 1.0, %v529_v41 }
 0x79c   :  { %v531_v44 = vmul.f32 %v1696_v40, %v530_v42 }
 0x79e   :  { %v532_v45 = vadd.f32 %v1696_v40, %v531_v44 }
 0x7a0   :  { %v536_v27 = vsel %vm535_vm13, %v1696_v40, %v532_v45 }
 0x7a1   :  { %v541_v54 = vsel %vm538_vm14, %v540_v51, %v536_v27 }
 0x7a2   :  { %v544_v60 = vmul.f32 %v541_v54, %v1964_v48  ;;  %v1627_v48 = vld [vmem:[%s2189_s3 + $0x28] sm:$0xff] }
 0x7a3   :  { %591 = vmatpush.bf16.msrb.mxu0 %v1627_v48 }
 0x7a7   :  { %592 = vmatpush.bf16.msrb.mxu0 %v1626_v11 }
 0x7d2   :  { %v642_v30 = vpop.permute.xlu2 %641 }
 0x7d3   :  { %v644_v31 = vmul.f32 %v642_v30, %v633_v37 }
 0x7d5   :  { %646 = vrot.lane.b32.xlu1 %v644_v31, %s1806_s27 }
 0x7f6   :  { %v547_v52 = vpop.permute.xlu0 %546 }
 0x7f7   :  { %v549_v55 = vmul.f32 %v547_v52, %v541_v54 }
 0x7f9   :  { %551 = vrot.lane.b32.xlu2 %v549_v55, %s1806_s27 }
 0x847   :  { %v647_v32 = vpop.permute.xlu1 %646 }
 0x848   :  { %v1999_v58 = vadd.f32 %v647_v32, %v639_v57 }
 0x84a   :  { %1697 = vtanh.f32 %v1999_v58 }
 0x850   :  { %v1698_v59 = vpop.eup %1697 }
 0x851   :  { %652 = vrot.lane.b32.xlu0 %v1698_v59, %s1805_s26 }
 0x853   :  { %v552_v61 = vpop.permute.xlu2 %551 }
 0x854   :  { %v2004_v62 = vadd.f32 %v552_v61, %v544_v60 }
 0x856   :  { %1699 = vtanh.f32 %v2004_v62 }
 0x85c   :  { %v1700_v63 = vpop.eup %1699 }
 0x85d   :  { %557 = vrot.lane.b32.xlu1 %v1700_v63, %s1805_s26 }
 0x8c3   :  { %v653_v43 = vpop.permute.xlu0 %652 }
 0x8c4   :  { %v655_v0 = vmul.f32 %v653_v43, %v633_v37 }
 0x8c6   :  { %v656_v2 = vpack.c.bf16 %v655_v0, %v655_v0  ;;  %v801_v0 = vrot.slane %v1999_v58, 6 }
 0x8c8   :  { %v658_v3 = vrot.slane %v656_v2, 3 }
 0x8ca   :  { %659 = vrot.lane.b32.xlu2 %v658_v3, %s1806_s27 }
 0x8cf   :  { %v558_v4 = vpop.permute.xlu1 %557 }
 0x8d0   :  { %v560_v6 = vmul.f32 %v558_v4, %v541_v54 }
 0x8d2   :  { %v561_v10 = vpack.c.bf16 %v560_v6, %v560_v6 }
 0x8d4   :  { %568 = vrot.lane.b32.xlu0 %v561_v10, %s1806_s27 }
 0x924   :  { %v660_v12 = vpop.permute.xlu2 %659 }
 0x925   :  { %1527 = vmatmul.msk.bf16.vlgmr.msrb.gmra.mxu2 %vm77_vm5, %v660_v12  ;;  %1543 = vmatmul.msk.bf16.vlgmr.msra.gmra.mxu1 %vm77_vm5, %v660_v12 }
 0x926   :  { %1000 = vmatpush.bf16.msrb.mxu2 %v1881_v34  ;;  %1102 = vmatpush.bf16.msra.mxu1 %v1839_v1 }
 0x92a   :  { %1001 = vmatpush.bf16.msrb.mxu2 %v1893_v36  ;;  %1103 = vmatpush.bf16.msra.mxu1 %v1851_v5 }
 0x946   :  { %v569_v13 = vpop.permute.xlu0 %568 }
 0x947   :  { %1524 = vmatmul.msk.bf16.vlgmr.msrb.gmra.mxu0 %vm77_vm5, %v569_v13  ;;  %1528 = vmatmul.msk.bf16.vlgmr.msrb.gmra.mxu3 %vm77_vm5, %v569_v13 }
 0x948   :  { %1013 = vmatpush.bf16.msrb.mxu3 %v1876_v33 }
 0x94c   :  { %1014 = vmatpush.bf16.msrb.mxu3 %v1888_v35 }
 0x9a2   :  { %v775_v15 = vpop.f32.mrf.mxu1 }
 0x9a3   :  { %v779_v16 = vadd.f32 %v775_v15, %v2028_v14 }
 0x9a5   :  { %1701 = vtanh.f32 %v779_v16  ;;  %v1544_v25 = vmul.f32 -1.442695, %v779_v16 }
 0x9a8   :  { %v673_v9 = vpop.f32.mrf.mxu2 }
 0x9a9   :  { %v674_v21 = vadd.f32 %v1914_v46, %v673_v9 }
 0x9aa   :  { %v777_v17 = vpop.f32.mrf.mxu1 }
 0x9ab   :  { %v1702_v53 = vpop.eup %1701 }
 0x9ac   :  { %805 = vrot.lane.b32.xlu1 %v1702_v53, %s1805_s26  ;;  %v1628_v53 = vld [vmem:[%s2189_s3 + $0x30] sm:$0xff] }
 0x9b0   :  { %v675_v18 = vpop.f32.mrf.mxu2 }
 0x9c4   :  { %v594_v19 = vpop.f32.mrf.mxu0 }
 0x9c5   :  { %v2033_v20 = vadd.f32 %v594_v19, %v1991_v8 }
 0x9ca   :  { %v686_v22 = vpop.f32.mrf.mxu3 }
 0x9cb   :  { %v690_v23 = vadd.f32 %v686_v22, %v674_v21 }
 0x9cc   :  { %v596_v7 = vpop.f32.mrf.mxu0 }
 0x9cd   :  { %1703 = vtanh.f32 %v690_v23  ;;  %v1529_v29 = vmul.f32 -1.442695, %v690_v23 }
 0x9ce   :  { %1705 = vpow2.f32 %v1544_v25 }
 0x9d2   :  { %v688_v49 = vpop.f32.mrf.mxu3 }
 0x9d3   :  { %v1704_v24 = vpop.eup %1703 }
 0x9d4   :  { %713 = vrot.lane.b32.xlu2 %v1704_v24, %s1805_s26  ;;  %v1706_v26 = vpop.eup %1705 }
 0x9d5   :  { %v783_v28 = vadd.f32 1.0, %v1706_v26 }
 0x9d7   :  { %1707 = vrcp.f32 %v783_v28  ;;  %v795_v42 = vand.u32 2147483648, %v783_v28  ;;  %vm789_vm0 = vweird.f32 %v783_v28  ;;  %v793_v44 = vand.u32 2147483647, %v783_v28 }
 0x9d8   :  { %1709 = vpow2.f32 %v1529_v29 }
 0x9d9   :  { %v796_v50 = vor.u32 1.1754944e-38, %v795_v42  ;;  %vm794_vm2 = vcmp.eq.f32.partialorder %v793_v44, 8.507059e+37 }
 0x9dd   :  { %v1708_v30 = vpop.eup %1707 }
 0x9de   :  { %v1710_v8 = vpop.eup %1709  ;;  %v785_v37 = vmul.f32 %v1708_v30, %v783_v28  ;;  %vm790_vm15 = vweird.f32 %v1708_v30 }
 0x9df   :  { %v694_v38 = vadd.f32 1.0, %v1710_v8  ;;  %vm791_vm1 = vmor %vm789_vm0, %vm790_vm15 }
 0x9e0   :  { %v786_v31 = vsub.f32 1.0, %v785_v37 }
 0x9e1   :  { %1711 = vrcp.f32 %v694_v38  ;;  %v706_v57 = vand.u32 2147483648, %v694_v38  ;;  %vm700_vm4 = vweird.f32 %v694_v38  ;;  %v704_v32 = vand.u32 2147483647, %v694_v38 }
 0x9e2   :  { %v787_v39 = vmul.f32 %v1708_v30, %v786_v31 }
 0x9e3   :  { %v707_v60 = vor.u32 1.1754944e-38, %v706_v57  ;;  %vm705_vm7 = vcmp.eq.f32.partialorder %v704_v32, 8.507059e+37 }
 0x9e4   :  { %v788_v40 = vadd.f32 %v1708_v30, %v787_v39 }
 0x9e6   :  { %v792_v45 = vsel %vm791_vm1, %v1708_v30, %v788_v40 }
 0x9e7   :  { %v1712_v41 = vpop.eup %1711  ;;  %v797_v27 = vsel %vm794_vm2, %v796_v50, %v792_v45 }
 0x9e8   :  { %v696_v47 = vmul.f32 %v1712_v41, %v694_v38  ;;  %vm701_vm3 = vweird.f32 %v1712_v41  ;;  %v803_v2 = vmul.f32 %v801_v0, %v797_v27 }
 0x9e9   :  { %vm702_vm6 = vmor %vm700_vm4, %vm701_vm3 }
 0x9ea   :  { %v697_v54 = vsub.f32 1.0, %v696_v47 }
 0x9ec   :  { %v698_v55 = vmul.f32 %v1712_v41, %v697_v54 }
 0x9ee   :  { %v699_v56 = vadd.f32 %v1712_v41, %v698_v55 }
 0x9f0   :  { %v703_v59 = vsel %vm702_vm6, %v1712_v41, %v699_v56 }
 0x9f1   :  { %v708_v63 = vsel %vm705_vm7, %v707_v60, %v703_v59 }
 0x9f2   :  { %v711_v10 = vmul.f32 %v708_v63, %v2004_v62  ;;  %v1629_v62 = vld [vmem:[%s2189_s3 + $0x38] sm:$0xff] }
 0x9f3   :  { %758 = vmatpush.bf16.msra.mxu0 %v1629_v62 }
 0x9f7   :  { %759 = vmatpush.bf16.msra.mxu0 %v1628_v53 }
 0xa1e   :  { %v806_v51 = vpop.permute.xlu1 %805 }
 0xa1f   :  { %v808_v52 = vmul.f32 %v806_v51, %v797_v27 }
 0xa21   :  { %810 = vrot.lane.b32.xlu0 %v808_v52, %s1806_s27 }
 0xa2e   :  { %v714_v61 = vpop.permute.xlu2 %713 }
 0xa2f   :  { %v716_v43 = vmul.f32 %v714_v61, %v708_v63 }
 0xa31   :  { %718 = vrot.lane.b32.xlu1 %v716_v43, %s1806_s27 }
 0xa93   :  { %v811_v3 = vpop.permute.xlu0 %810 }
 0xa94   :  { %v2040_v4 = vadd.f32 %v811_v3, %v803_v2 }
 0xa96   :  { %1713 = vtanh.f32 %v2040_v4  ;;  %v967_v3 = vrot.slane %v2040_v4, 6 }
 0xa9c   :  { %v1714_v6 = vpop.eup %1713 }
 0xa9d   :  { %816 = vrot.lane.b32.xlu2 %v1714_v6, %s1805_s26 }
 0xaa3   :  { %v719_v48 = vpop.permute.xlu1 %718 }
 0xaa4   :  { %v2045_v11 = vadd.f32 %v719_v48, %v711_v10 }
 0xaa6   :  { %1715 = vtanh.f32 %v2045_v11 }
 0xaac   :  { %v1716_v12 = vpop.eup %1715 }
 0xaad   :  { %724 = vrot.lane.b32.xlu0 %v1716_v12, %s1805_s26 }
 0xaf7   :  { %v817_v58 = vpop.permute.xlu2 %816 }
 0xaf8   :  { %v819_v13 = vmul.f32 %v817_v58, %v797_v27 }
 0xafa   :  { %v820_v15 = vpack.c.bf16 %v819_v13, %v819_v13 }
 0xafc   :  { %822 = vrot.lane.b32.xlu1 %v820_v15, %s1806_s27 }
 0xb1f   :  { %v725_v16 = vpop.permute.xlu0 %724 }
 0xb20   :  { %v727_v9 = vmul.f32 %v725_v16, %v708_v63 }
 0xb22   :  { %v728_v17 = vpack.c.bf16 %v727_v9, %v727_v9 }
 0xb24   :  { %735 = vrot.lane.b32.xlu2 %v728_v17, %s1806_s27 }
 0xb6e   :  { %v823_v18 = vpop.permute.xlu1 %822 }
 0xb6f   :  { %1545 = vmatmul.msk.bf16.vlgmr.msra.gmra.mxu2 %vm77_vm5, %v823_v18  ;;  %1561 = vmatmul.msk.bf16.vlgmr.msrb.gmra.mxu1 %vm77_vm5, %v823_v18 }
 0xb70   :  { %1167 = vmatpush.bf16.msra.mxu2 %v1881_v34  ;;  %1269 = vmatpush.bf16.msrb.mxu1 %v1839_v1 }
 0xb74   :  { %1168 = vmatpush.bf16.msra.mxu2 %v1893_v36  ;;  %1270 = vmatpush.bf16.msrb.mxu1 %v1851_v5 }
 0xb7e   :  { %v736_v19 = vpop.permute.xlu2 %735 }
 0xb7f   :  { %1542 = vmatmul.msk.bf16.vlgmr.msra.gmra.mxu0 %vm77_vm5, %v736_v19  ;;  %1546 = vmatmul.msk.bf16.vlgmr.msra.gmra.mxu3 %vm77_vm5, %v736_v19 }
 0xb80   :  { %1180 = vmatpush.bf16.msra.mxu3 %v1876_v33 }
 0xb84   :  { %1181 = vmatpush.bf16.msra.mxu3 %v1888_v35 }
 0xbec   :  { %v938_v21 = vpop.f32.mrf.mxu1 }
 0xbed   :  { %v943_v22 = vrot.slane %v938_v21, 6  ;;  %v1630_v21 = vld [vmem:[%s2189_s3 + $0x40] sm:$0xff] }
 0xbef   :  { %v945_v23 = vadd.f32 %v943_v22, %v2028_v14 }
 0xbf1   :  { %1717 = vtanh.f32 %v945_v23  ;;  %v1562_v29 = vmul.f32 -1.442695, %v945_v23  ;;  %v1773_v23 = vld [vmem:[%s2187_s1 + $0x20] sm:$0xff] }
 0xbf2   :  { %v836_v34 = vpop.f32.mrf.mxu2 }
 0xbf3   :  { %v837_v24 = vadd.f32 %v1914_v46, %v836_v34  ;;  %v1774_v34 = vld [vmem:[%s2187_s1 + $0x18] sm:$0xff] }
 0xbf4   :  { %v940_v1 = vpop.f32.mrf.mxu1 }
 0xbf7   :  { %v1718_v7 = vpop.eup %1717 }
 0xbf8   :  { %971 = vrot.lane.b32.xlu0 %v1718_v7, %s1805_s26  ;;  %v1775_v7 = vld [vmem:[%s2187_s1 + $0x30] sm:$0xff] }
 0xbfa   :  { %v838_v5 = vpop.f32.mrf.mxu2 }
 0xbfb   :  { %v1776_v5 = vld [vmem:[%s2187_s1 + $0x28] sm:$0xff] }
 0xbfc   :  { %v761_v36 = vpop.f32.mrf.mxu0 }
 0xbfd   :  { %v2070_v49 = vadd.f32 %v761_v36, %v2033_v20 }
 0xc02   :  { %v849_v33 = vpop.f32.mrf.mxu3 }
 0xc03   :  { %v853_v25 = vadd.f32 %v849_v33, %v837_v24 }
 0xc04   :  { %v763_v35 = vpop.f32.mrf.mxu0 }
 0xc05   :  { %1719 = vtanh.f32 %v853_v25  ;;  %v1547_v37 = vmul.f32 -1.442695, %v853_v25 }
 0xc06   :  { %1721 = vpow2.f32 %v1562_v29 }
 0xc0a   :  { %v851_v26 = vpop.f32.mrf.mxu3 }
 0xc0b   :  { %v1720_v28 = vpop.eup %1719 }
 0xc0c   :  { %876 = vrot.lane.b32.xlu1 %v1720_v28, %s1805_s26  ;;  %v1722_v30 = vpop.eup %1721 }
 0xc0d   :  { %v949_v8 = vadd.f32 1.0, %v1722_v30 }
 0xc0f   :  { %1723 = vrcp.f32 %v949_v8  ;;  %v961_v44 = vand.u32 2147483648, %v949_v8  ;;  %vm955_vm9 = vweird.f32 %v949_v8  ;;  %v959_v45 = vand.u32 2147483647, %v949_v8 }
 0xc10   :  { %1725 = vpow2.f32 %v1547_v37 }
 0xc11   :  { %v962_v27 = vor.u32 1.1754944e-38, %v961_v44  ;;  %vm960_vm11 = vcmp.eq.f32.partialorder %v959_v45, 8.507059e+37 }
 0xc15   :  { %v1724_v38 = vpop.eup %1723 }
 0xc16   :  { %v951_v20 = vmul.f32 %v1724_v38, %v949_v8  ;;  %v1726_v31 = vpop.eup %1725  ;;  %vm956_vm8 = vweird.f32 %v1724_v38 }
 0xc17   :  { %v857_v40 = vadd.f32 1.0, %v1726_v31  ;;  %vm957_vm10 = vmor %vm955_vm9, %vm956_vm8 }
 0xc18   :  { %v952_v39 = vsub.f32 1.0, %v951_v20 }
 0xc19   :  { %1727 = vrcp.f32 %v857_v40  ;;  %v869_v59 = vand.u32 2147483648, %v857_v40  ;;  %vm863_vm13 = vweird.f32 %v857_v40  ;;  %v867_v60 = vand.u32 2147483647, %v857_v40 }
 0xc1a   :  { %v953_v41 = vmul.f32 %v1724_v38, %v952_v39 }
 0xc1b   :  { %v870_v63 = vor.u32 1.1754944e-38, %v869_v59  ;;  %vm868_vm15 = vcmp.eq.f32.partialorder %v867_v60, 8.507059e+37 }
 0xc1c   :  { %v954_v42 = vadd.f32 %v1724_v38, %v953_v41 }
 0xc1e   :  { %v958_v47 = vsel %vm957_vm10, %v1724_v38, %v954_v42 }
 0xc1f   :  { %v1728_v50 = vpop.eup %1727  ;;  %v963_v52 = vsel %vm960_vm11, %v962_v27, %v958_v47 }
 0xc20   :  { %v859_v55 = vmul.f32 %v1728_v50, %v857_v40  ;;  %vm864_vm12 = vweird.f32 %v1728_v50  ;;  %v969_v6 = vmul.f32 %v967_v3, %v963_v52 }
 0xc21   :  { %vm865_vm14 = vmor %vm863_vm13, %vm864_vm12 }
 0xc22   :  { %v860_v56 = vsub.f32 1.0, %v859_v55 }
 0xc24   :  { %v861_v57 = vmul.f32 %v1728_v50, %v860_v56 }
 0xc26   :  { %v862_v32 = vadd.f32 %v1728_v50, %v861_v57 }
 0xc28   :  { %v866_v61 = vsel %vm865_vm14, %v1728_v50, %v862_v32 }
 0xc29   :  { %v871_v0 = vsel %vm868_vm15, %v870_v63, %v866_v61 }
 0xc2a   :  { %v874_v58 = vmul.f32 %v871_v0, %v2045_v11  ;;  %v1631_v11 = vld [vmem:[%s2189_s3 + $0x48] sm:$0xff] }
 0xc2b   :  { %921 = vmatpush.bf16.msrb.mxu0 %v1631_v11 }
 0xc2f   :  { %922 = vmatpush.bf16.msrb.mxu0 %v1630_v21 }
 0xc6a   :  { %v972_v51 = vpop.permute.xlu0 %971 }
 0xc6b   :  { %v974_v54 = vmul.f32 %v972_v51, %v963_v52 }
 0xc6d   :  { %976 = vrot.lane.b32.xlu2 %v974_v54, %s1806_s27 }
 0xc7e   :  { %v877_v43 = vpop.permute.xlu1 %876 }
 0xc7f   :  { %v879_v2 = vmul.f32 %v877_v43, %v871_v0 }
 0xc81   :  { %881 = vrot.lane.b32.xlu0 %v879_v2, %s1806_s27 }
 0xcc7   :  { %v977_v10 = vpop.permute.xlu2 %976 }
 0xcc8   :  { %v2077_v48 = vadd.f32 %v977_v10, %v969_v6 }
 0xcca   :  { %1729 = vtanh.f32 %v2077_v48 }
 0xcd0   :  { %v1730_v12 = vpop.eup %1729 }
 0xcd1   :  { %982 = vrot.lane.b32.xlu1 %v1730_v12, %s1805_s26 }
 0xcf3   :  { %v882_v13 = vpop.permute.xlu0 %881 }
 0xcf4   :  { %v2082_v15 = vadd.f32 %v882_v13, %v874_v58 }
 0xcf6   :  { %1731 = vtanh.f32 %v2082_v15 }
 0xcfc   :  { %v1732_v16 = vpop.eup %1731 }
 0xcfd   :  { %887 = vrot.lane.b32.xlu2 %v1732_v16, %s1805_s26  ;;  %v1134_v16 = vrot.slane %v2077_v48, 6 }
 0xd43   :  { %v983_v4 = vpop.permute.xlu1 %982 }
 0xd44   :  { %v985_v9 = vmul.f32 %v983_v4, %v963_v52 }
 0xd46   :  { %v986_v17 = vpack.c.bf16 %v985_v9, %v985_v9 }
 0xd48   :  { %v988_v62 = vrot.slane %v986_v17, 1 }
 0xd4a   :  { %989 = vrot.lane.b32.xlu0 %v988_v62, %s1806_s27 }
 0xd57   :  { %v888_v53 = vpop.permute.xlu2 %887 }
 0xd58   :  { %v890_v18 = vmul.f32 %v888_v53, %v871_v0 }
 0xd5a   :  { %v891_v19 = vpack.c.bf16 %v890_v18, %v890_v18 }
 0xd5c   :  { %898 = vrot.lane.b32.xlu1 %v891_v19, %s1806_s27 }
 0xdbc   :  { %v990_v22 = vpop.permute.xlu0 %989 }
 0xdbd   :  { %1563 = vmatmul.msk.bf16.vlgmr.msrb.gmra.mxu2 %vm77_vm5, %v990_v22  ;;  %1579 = vmatmul.msk.bf16.vlgmr.msra.gmra.mxu1 %vm77_vm5, %v990_v22 }
 0xdbe   :  { %1334 = vmatpush.bf16.msrb.mxu2 %v1773_v23 }
 0xdc2   :  { %1335 = vmatpush.bf16.msrb.mxu2 %v1774_v34 }
 0xdce   :  { %v899_v1 = vpop.permute.xlu1 %898 }
 0xdcf   :  { %1560 = vmatmul.msk.bf16.vlgmr.msrb.gmra.mxu0 %vm77_vm5, %v899_v1  ;;  %1564 = vmatmul.msk.bf16.vlgmr.msrb.gmra.mxu3 %vm77_vm5, %v899_v1 }
 0xdd0   :  { %1347 = vmatpush.bf16.msrb.mxu3 %v1775_v7 }
 0xdd4   :  { %1348 = vmatpush.bf16.msrb.mxu3 %v1776_v5  ;;  %v1632_v5 = vld [vmem:[%s2189_s3 + $0x50] sm:$0xff] }
 0xe3a   :  { %v1105_v36 = vpop.f32.mrf.mxu1 }
 0xe3b   :  { %v1110_v24 = vrot.slane %v1105_v36, 4 }
 0xe3d   :  { %v1112_v33 = vadd.f32 %v1110_v24, %v2028_v14 }
 0xe3f   :  { %1733 = vtanh.f32 %v1112_v33  ;;  %v1580_v40 = vmul.f32 -1.442695, %v1112_v33 }
 0xe40   :  { %v1003_v25 = vpop.f32.mrf.mxu2 }
 0xe41   :  { %v1004_v8 = vadd.f32 %v1914_v46, %v1003_v25 }
 0xe42   :  { %v1107_v35 = vpop.f32.mrf.mxu1 }
 0xe45   :  { %v1734_v26 = vpop.eup %1733 }
 0xe46   :  { %1138 = vrot.lane.b32.xlu2 %v1734_v26, %s1805_s26 }
 0xe48   :  { %v1005_v28 = vpop.f32.mrf.mxu2 }
 0xe4c   :  { %v924_v29 = vpop.f32.mrf.mxu0 }
 0xe4d   :  { %v2113_v30 = vadd.f32 %v924_v29, %v2070_v49 }
 0xe52   :  { %v1016_v37 = vpop.f32.mrf.mxu3 }
 0xe53   :  { %v1020_v38 = vadd.f32 %v1016_v37, %v1004_v8 }
 0xe54   :  { %v926_v20 = vpop.f32.mrf.mxu0 }
 0xe55   :  { %1735 = vtanh.f32 %v1020_v38  ;;  %v1565_v56 = vmul.f32 -1.442695, %v1020_v38  ;;  %v2149_v20 = vld [vmem:[%s2188_s2 + $0x1] ss:$0 sm:$0xff] }
 0xe56   :  { %1737 = vpow2.f32 %v1580_v40 }
 0xe5a   :  { %v1018_v31 = vpop.f32.mrf.mxu3 }
 0xe5b   :  { %v1736_v39 = vpop.eup %1735 }
 0xe5c   :  { %1043 = vrot.lane.b32.xlu0 %v1736_v39, %s1805_s26  ;;  %v1738_v41 = vpop.eup %1737 }
 0xe5d   :  { %v1116_v42 = vadd.f32 1.0, %v1738_v41 }
 0xe5f   :  { %1739 = vrcp.f32 %v1116_v42  ;;  %v1128_v46 = vand.u32 2147483648, %v1116_v42  ;;  %vm1122_vm1 = vweird.f32 %v1116_v42  ;;  %v1126_v27 = vand.u32 2147483647, %v1116_v42 }
 0xe60   :  { %1741 = vpow2.f32 %v1565_v56 }
 0xe61   :  { %v1129_v52 = vor.u32 1.1754944e-38, %v1128_v46  ;;  %vm1127_vm3 = vcmp.eq.f32.partialorder %v1126_v27, 8.507059e+37 }
 0xe65   :  { %v1740_v44 = vpop.eup %1739 }
 0xe66   :  { %v1118_v45 = vmul.f32 %v1740_v44, %v1116_v42  ;;  %vm1123_vm0 = vweird.f32 %v1740_v44  ;;  %v1742_v32 = vpop.eup %1741 }
 0xe67   :  { %vm1124_vm2 = vmor %vm1122_vm1, %vm1123_vm0  ;;  %v1024_v59 = vadd.f32 1.0, %v1742_v32 }
 0xe68   :  { %v1119_v47 = vsub.f32 1.0, %v1118_v45 }
 0xe69   :  { %1743 = vrcp.f32 %v1024_v59  ;;  %v1036_v2 = vand.u32 2147483648, %v1024_v59  ;;  %vm1030_vm6 = vweird.f32 %v1024_v59  ;;  %v1034_v3 = vand.u32 2147483647, %v1024_v59 }
 0xe6a   :  { %v1120_v49 = vmul.f32 %v1740_v44, %v1119_v47 }
 0xe6b   :  { %v1037_v10 = vor.u32 1.1754944e-38, %v1036_v2  ;;  %vm1035_vm8 = vcmp.eq.f32.partialorder %v1034_v3, 8.507059e+37 }
 0xe6c   :  { %v1121_v50 = vadd.f32 %v1740_v44, %v1120_v49 }
 0xe6e   :  { %v1125_v51 = vsel %vm1124_vm2, %v1740_v44, %v1121_v50 }
 0xe6f   :  { %v1130_v54 = vsel %vm1127_vm3, %v1129_v52, %v1125_v51  ;;  %v1744_v60 = vpop.eup %1743 }
 0xe70   :  { %v1026_v61 = vmul.f32 %v1744_v60, %v1024_v59  ;;  %vm1031_vm4 = vweird.f32 %v1744_v60  ;;  %v1136_v4 = vmul.f32 %v1134_v16, %v1130_v54 }
 0xe71   :  { %vm1032_vm7 = vmor %vm1030_vm6, %vm1031_vm4  ;;  %vm1430_vm6 = vcmask 25600  }
 0xe72   :  { %v1027_v63 = vsub.f32 1.0, %v1026_v61 }
 0xe74   :  { %v1028_v43 = vmul.f32 %v1744_v60, %v1027_v63 }
 0xe76   :  { %v1029_v0 = vadd.f32 %v1744_v60, %v1028_v43 }
 0xe78   :  { %v1033_v6 = vsel %vm1032_vm7, %v1744_v60, %v1029_v0 }
 0xe79   :  { %v1038_v58 = vsel %vm1035_vm8, %v1037_v10, %v1033_v6 }
 0xe7a   :  { %v1041_v53 = vmul.f32 %v1038_v58, %v2082_v15  ;;  %v1633_v15 = vld [vmem:[%s2189_s3 + $0x58] sm:$0xff] }
 0xe7b   :  { %1088 = vmatpush.bf16.msra.mxu0 %v1633_v15 }
 0xe7f   :  { %1089 = vmatpush.bf16.msra.mxu0 %v1632_v5 }
 0xea0   :  { %v1139_v55 = vpop.permute.xlu2 %1138 }
 0xea1   :  { %v1141_v57 = vmul.f32 %v1139_v55, %v1130_v54 }
 0xea3   :  { %1143 = vrot.lane.b32.xlu1 %v1141_v57, %s1806_s27 }
 0xece   :  { %v1044_v12 = vpop.permute.xlu0 %1043 }
 0xecf   :  { %v1046_v13 = vmul.f32 %v1044_v12, %v1038_v58 }
 0xed1   :  { %1048 = vrot.lane.b32.xlu2 %v1046_v13, %s1806_s27 }
 0xf15   :  { %v1144_v9 = vpop.permute.xlu1 %1143 }
 0xf16   :  { %v2120_v17 = vadd.f32 %v1144_v9, %v1136_v4 }
 0xf18   :  { %1745 = vtanh.f32 %v2120_v17  ;;  %v1301_v9 = vrot.slane %v2120_v17, 6 }
 0xf1e   :  { %v1746_v62 = vpop.eup %1745 }
 0xf1f   :  { %1149 = vrot.lane.b32.xlu0 %v1746_v62, %s1805_s26 }
 0xf2b   :  { %v1049_v18 = vpop.permute.xlu2 %1048 }
 0xf2c   :  { %v2125_v19 = vadd.f32 %v1049_v18, %v1041_v53 }
 0xf2e   :  { %1747 = vtanh.f32 %v2125_v19 }
 0xf34   :  { %v1748_v11 = vpop.eup %1747 }
 0xf35   :  { %1054 = vrot.lane.b32.xlu1 %v1748_v11, %s1805_s26 }
 0xf91   :  { %v1150_v48 = vpop.permute.xlu0 %1149 }
 0xf92   :  { %v1152_v21 = vmul.f32 %v1150_v48, %v1130_v54 }
 0xf94   :  { %v1153_v22 = vpack.c.bf16 %v1152_v21, %v1152_v21 }
 0xf96   :  { %v1155_v23 = vrot.slane %v1153_v22, 2 }
 0xf98   :  { %1156 = vrot.lane.b32.xlu2 %v1155_v23, %s1806_s27 }
 0xfa7   :  { %v1055_v34 = vpop.permute.xlu1 %1054 }
 0xfa8   :  { %v1057_v1 = vmul.f32 %v1055_v34, %v1038_v58 }
 0xfaa   :  { %v1058_v7 = vpack.c.bf16 %v1057_v1, %v1057_v1 }
 0xfac   :  { %1065 = vrot.lane.b32.xlu0 %v1058_v7, %s1806_s27 }
 0xff2   :  { %v1157_v36 = vpop.permute.xlu2 %1156 }
 0xff3   :  { %1581 = vmatmul.msk.bf16.vlgmr.msra.gmra.mxu2 %vm77_vm5, %v1157_v36  ;;  %1597 = vmatmul.msk.bf16.vlgmr.msrb.gmra.mxu1 %vm77_vm5, %v1157_v36 }
0x101e   :  { %v1066_v24 = vpop.permute.xlu0 %1065 }
0x101f   :  { %1578 = vmatmul.msk.bf16.vlgmr.msra.gmra.mxu0 %vm77_vm5, %v1066_v24  ;;  %1582 = vmatmul.msk.bf16.vlgmr.msra.gmra.mxu3 %vm77_vm5, %v1066_v24  ;;  %v1634_v24 = vld [vmem:[%s2189_s3 + $0x60] sm:$0xff] }
0x1070   :  { %v1272_v33 = vpop.f32.mrf.mxu1 }
0x1071   :  { %v1277_v25 = vrot.slane %v1272_v33, 2 }
0x1073   :  { %v1279_v35 = vadd.f32 %v1277_v25, %v2028_v14 }
0x1075   :  { %1749 = vtanh.f32 %v1279_v35  ;;  %v1598_v44 = vmul.f32 -1.442695, %v1279_v35 }
0x1076   :  { %v1170_v26 = vpop.f32.mrf.mxu2 }
0x1077   :  { %v1171_v31 = vadd.f32 %v2149_v20, %v1170_v26 }
0x1078   :  { %v1274_v28 = vpop.f32.mrf.mxu1 }
0x107b   :  { %v1750_v29 = vpop.eup %1749 }
0x107c   :  { %1305 = vrot.lane.b32.xlu1 %v1750_v29, %s1805_s26 }
0x107e   :  { %v1172_v8 = vpop.f32.mrf.mxu2 }
0x109c   :  { %v1091_v37 = vpop.f32.mrf.mxu0 }
0x109d   :  { %v2144_v38 = vadd.f32 %v1091_v37, %v2113_v30 }
0x10a2   :  { %v1183_v39 = vpop.f32.mrf.mxu3 }
0x10a3   :  { %v1187_v14 = vadd.f32 %v1183_v39, %v1171_v31 }
0x10a4   :  { %v1093_v40 = vpop.f32.mrf.mxu0 }
0x10a5   :  { %1751 = vtanh.f32 %v1187_v14  ;;  %v1583_v49 = vmul.f32 -1.442695, %v1187_v14 }
0x10a6   :  { %1753 = vpow2.f32 %v1598_v44 }
0x10aa   :  { %v1185_v41 = vpop.f32.mrf.mxu3 }
0x10ab   :  { %v1752_v42 = vpop.eup %1751 }
0x10ac   :  { %1210 = vrot.lane.b32.xlu2 %v1752_v42, %s1805_s26  ;;  %v1754_v45 = vpop.eup %1753 }
0x10ad   :  { %v1283_v30 = vadd.f32 1.0, %v1754_v45 }
0x10af   :  { %1755 = vrcp.f32 %v1283_v30  ;;  %v1295_v55 = vand.u32 2147483648, %v1283_v30  ;;  %vm1289_vm10 = vweird.f32 %v1283_v30  ;;  %v1293_v56 = vand.u32 2147483647, %v1283_v30 }
0x10b0   :  { %1757 = vpow2.f32 %v1583_v49 }
0x10b1   :  { %v1296_v32 = vor.u32 1.1754944e-38, %v1295_v55  ;;  %vm1294_vm12 = vcmp.eq.f32.partialorder %v1293_v56, 8.507059e+37 }
0x10b5   :  { %v1756_v47 = vpop.eup %1755 }
0x10b6   :  { %v1285_v50 = vmul.f32 %v1756_v47, %v1283_v30  ;;  %v1758_v27 = vpop.eup %1757  ;;  %vm1290_vm9 = vweird.f32 %v1756_v47 }
0x10b7   :  { %v1191_v52 = vadd.f32 1.0, %v1758_v27  ;;  %vm1291_vm11 = vmor %vm1289_vm10, %vm1290_vm9 }
0x10b8   :  { %v1286_v46 = vsub.f32 1.0, %v1285_v50 }
0x10b9   :  { %1759 = vrcp.f32 %v1191_v52  ;;  %v1203_v6 = vand.u32 2147483648, %v1191_v52  ;;  %vm1197_vm14 = vweird.f32 %v1191_v52  ;;  %v1201_v10 = vand.u32 2147483647, %v1191_v52 }
0x10ba   :  { %v1287_v51 = vmul.f32 %v1756_v47, %v1286_v46 }
0x10bb   :  { %v1204_v58 = vor.u32 1.1754944e-38, %v1203_v6  ;;  %vm1202_vm0 = vcmp.eq.f32.partialorder %v1201_v10, 8.507059e+37 }
0x10bc   :  { %v1288_v54 = vadd.f32 %v1756_v47, %v1287_v51 }
0x10be   :  { %v1292_v57 = vsel %vm1291_vm11, %v1756_v47, %v1288_v54 }
0x10bf   :  { %v1297_v60 = vsel %vm1294_vm12, %v1296_v32, %v1292_v57  ;;  %v1760_v63 = vpop.eup %1759 }
0x10c0   :  { %v1193_v43 = vmul.f32 %v1760_v63, %v1191_v52  ;;  %vm1198_vm13 = vweird.f32 %v1760_v63  ;;  %v1303_v62 = vmul.f32 %v1301_v9, %v1297_v60 }
0x10c1   :  { %vm1199_vm15 = vmor %vm1197_vm14, %vm1198_vm13 }
0x10c2   :  { %v1194_v0 = vsub.f32 1.0, %v1193_v43 }
0x10c4   :  { %v1195_v2 = vmul.f32 %v1760_v63, %v1194_v0 }
0x10c6   :  { %v1196_v3 = vadd.f32 %v1760_v63, %v1195_v2 }
0x10c8   :  { %v1200_v12 = vsel %vm1199_vm15, %v1760_v63, %v1196_v3 }
0x10c9   :  { %v1205_v16 = vsel %vm1202_vm0, %v1204_v58, %v1200_v12 }
0x10ca   :  { %v1208_v48 = vmul.f32 %v1205_v16, %v2125_v19  ;;  %v1635_v19 = vld [vmem:[%s2189_s3 + $0x68] sm:$0xff] }
0x10cb   :  { %1255 = vmatpush.bf16.msrb.mxu0 %v1635_v19 }
0x10cf   :  { %1256 = vmatpush.bf16.msrb.mxu0 %v1634_v24 }
0x10ee   :  { %v1306_v59 = vpop.permute.xlu1 %1305 }
0x10ef   :  { %v1308_v61 = vmul.f32 %v1306_v59, %v1297_v60  ;;  %v1637_v59 = vld [vmem:[%s2189_s3 + $0x78] sm:$0xff] }
0x10f0   :  { %1422 = vmatpush.bf16.msra.mxu0 %v1637_v59 }
0x10f1   :  { %1310 = vrot.lane.b32.xlu0 %v1308_v61, %s1806_s27 }
0x1106   :  { %v1211_v13 = vpop.permute.xlu2 %1210 }
0x1107   :  { %v1213_v4 = vmul.f32 %v1211_v13, %v1205_v16 }
0x1109   :  { %1215 = vrot.lane.b32.xlu1 %v1213_v4, %s1806_s27 }
0x1163   :  { %v1311_v53 = vpop.permute.xlu0 %1310 }
0x1164   :  { %v1313_v18 = vadd.f32 %v1311_v53, %v1303_v62 }
0x1166   :  { %1761 = vtanh.f32 %v1313_v18 }
0x116c   :  { %v1762_v11 = vpop.eup %1761 }
0x116d   :  { %1316 = vrot.lane.b32.xlu2 %v1762_v11, %s1805_s26 }
0x117b   :  { %v1216_v21 = vpop.permute.xlu1 %1215 }
0x117c   :  { %v1218_v22 = vadd.f32 %v1216_v21, %v1208_v48 }
0x117e   :  { %1763 = vtanh.f32 %v1218_v22 }
0x1184   :  { %v1764_v23 = vpop.eup %1763 }
0x1185   :  { %1221 = vrot.lane.b32.xlu0 %v1764_v23, %s1805_s26 }
0x11c7   :  { %v1317_v34 = vpop.permute.xlu2 %1316 }
0x11c8   :  { %v1319_v1 = vmul.f32 %v1317_v34, %v1297_v60  ;;  %v1636_v60 = vld [vmem:[%s2189_s3 + $0x70] sm:$0xff] }
0x11c9   :  { %1423 = vmatpush.bf16.msra.mxu0 %v1636_v60 }
0x11ca   :  { %v1320_v7 = vpack.c.bf16 %v1319_v1, %v1319_v1 }
0x11cc   :  { %v1322_v15 = vrot.slane %v1320_v7, 3 }
0x11ce   :  { %1323 = vrot.lane.b32.xlu1 %v1322_v15, %s1806_s27 }
0x11f7   :  { %v1222_v17 = vpop.permute.xlu0 %1221 }
0x11f8   :  { %v1224_v5 = vmul.f32 %v1222_v17, %v1205_v16 }
0x11fa   :  { %v1225_v36 = vpack.c.bf16 %v1224_v5, %v1224_v5 }
0x11fc   :  { %1232 = vrot.lane.b32.xlu2 %v1225_v36, %s1806_s27 }
0x1240   :  { %v1324_v33 = vpop.permute.xlu1 %1323 }
0x1241   :  { %1599 = vmatmul.msk.bf16.vlgmr.msrb.gmra.mxu2 %vm77_vm5, %v1324_v33 }
0x1256   :  { %v1233_v25 = vpop.permute.xlu2 %1232 }
0x1257   :  { %1596 = vmatmul.msk.bf16.vlgmr.msrb.gmra.mxu0 %vm77_vm5, %v1233_v25  ;;  %1600 = vmatmul.msk.bf16.vlgmr.msrb.gmra.mxu3 %vm77_vm5, %v1233_v25 }
0x12c4   :  { %v1337_v35 = vpop.f32.mrf.mxu2 }
0x12c5   :  { %v1338_v8 = vadd.f32 %v2149_v20, %v1337_v35 }
0x12cc   :  { %v1339_v26 = vpop.f32.mrf.mxu2 }
0x12d4   :  { %v1258_v28 = vpop.f32.mrf.mxu0 }
0x12d5   :  { %v1262_v29 = vadd.f32 %v1258_v28, %v2144_v38 }
0x12da   :  { %v1350_v37 = vpop.f32.mrf.mxu3 }
0x12db   :  { %v1354_v31 = vadd.f32 %v1350_v37, %v1338_v8 }
0x12dc   :  { %v1260_v39 = vpop.f32.mrf.mxu0 }
0x12dd   :  { %1765 = vtanh.f32 %v1354_v31  ;;  %v1601_v41 = vmul.f32 -1.442695, %v1354_v31 }
0x12df   :  { %1767 = vpow2.f32 %v1601_v41 }
0x12e2   :  { %v1352_v14 = vpop.f32.mrf.mxu3 }
0x12e3   :  { %v1766_v40 = vpop.eup %1765 }
0x12e4   :  { %1377 = vrot.lane.b32.xlu0 %v1766_v40, %s1805_s26 }
0x12e5   :  { %v1768_v42 = vpop.eup %1767 }
0x12e6   :  { %v1358_v44 = vadd.f32 1.0, %v1768_v42 }
0x12e8   :  { %1769 = vrcp.f32 %v1358_v44  ;;  %v1370_v20 = vand.u32 2147483648, %v1358_v44  ;;  %vm1364_vm2 = vweird.f32 %v1358_v44  ;;  %v1368_v50 = vand.u32 2147483647, %v1358_v44 }
0x12ea   :  { %v1371_v27 = vor.u32 1.1754944e-38, %v1370_v20  ;;  %vm1369_vm4 = vcmp.eq.f32.partialorder %v1368_v50, 8.507059e+37 }
0x12ee   :  { %v1770_v45 = vpop.eup %1769 }
0x12ef   :  { %v1360_v30 = vmul.f32 %v1770_v45, %v1358_v44  ;;  %vm1365_vm1 = vweird.f32 %v1770_v45 }
0x12f0   :  { %vm1366_vm3 = vmor %vm1364_vm2, %vm1365_vm1 }
0x12f1   :  { %v1361_v47 = vsub.f32 1.0, %v1360_v30 }
0x12f3   :  { %v1362_v49 = vmul.f32 %v1770_v45, %v1361_v47 }
0x12f5   :  { %v1363_v38 = vadd.f32 %v1770_v45, %v1362_v49 }
0x12f7   :  { %v1367_v46 = vsel %vm1366_vm3, %v1770_v45, %v1363_v38 }
0x12f8   :  { %v1372_v52 = vsel %vm1369_vm4, %v1371_v27, %v1367_v46 }
0x12f9   :  { %v1375_v55 = vmul.f32 %v1372_v52, %v1218_v22 }
0x1356   :  { %v1378_v51 = vpop.permute.xlu0 %1377 }
0x1357   :  { %v1380_v54 = vmul.f32 %v1378_v51, %v1372_v52 }
0x1359   :  { %1382 = vrot.lane.b32.xlu1 %v1380_v54, %s1806_s27 }
0x13cb   :  { %v1383_v56 = vpop.permute.xlu1 %1382 }
0x13cc   :  { %v1385_v57 = vadd.f32 %v1383_v56, %v1375_v55 }
0x13ce   :  { %1771 = vtanh.f32 %v1385_v57 }
0x13d4   :  { %v1772_v32 = vpop.eup %1771 }
0x13d5   :  { %1388 = vrot.lane.b32.xlu2 %v1772_v32, %s1805_s26  ;;  %s1437_s26 = sshll.u32 %s1807_s30, 4  ;;  %s1438_s26 = int_to_ptr.vmem [resolvable:$true] %s1437_s26 }
0x142f   :  { %v1389_v61 = vpop.permute.xlu2 %1388 }
0x1430   :  { %v1391_v63 = vmul.f32 %v1389_v61, %v1372_v52 }
0x1432   :  { %v1392_v43 = vpack.c.bf16 %v1391_v63, %v1391_v63 }
0x1434   :  { %1399 = vrot.lane.b32.xlu0 %v1392_v43, %s1806_s27 }
0x14a6   :  { %v1400_v0 = vpop.permute.xlu0 %1399 }
0x14a7   :  { %1614 = vmatmul.msk.bf16.vlgmr.msra.gmra.mxu0 %vm77_vm5, %v1400_v0 }
0x1524   :  { %v1425_v2 = vpop.f32.mrf.mxu0 }
0x1525   :  { %v1429_v3 = vadd.f32 %v1425_v2, %v1262_v29 }
0x1527   :  { %1431 = vst.msk [vmem:[#allocation2] sm:$0x3] %vm1430_vm6, %v1429_v3 }
0x1528   :  { %1442 = dma.vmem_to_hbm [thread:$0]  %s1438_s26, 32, %s1440_s7, [#allocation3]  }
0x152c   :  { %v1427_v6 = vpop.f32.mrf.mxu0 }
0x152d   :  { %1802 = dma.done.wait [#allocation3], 32  }
0x152e   :  { %1803 = vsyncadd [#allocation3], 4294967264 }
0x152f   :  { %1447 = vsyncpa [#allocation3], 1 }

</bundles_post_ra>
